<compile_context>
chip_gen: v7x
topology: tpu7x:2x2x1
jax: 0.10.0
libtpu: 0.0.40
codegen_flags: <defaults>
</compile_context>

<pallas_src>
import functools

import jax
import jax.numpy as jnp
from jax.experimental import pallas as pl
from jax.experimental.pallas import tpu as pltpu


def _round_up(x, m):
    return ((x + m - 1) // m) * m


def _vi_mlp_kernel(x_ref, wpre_ref, gamma_ref, beta_ref,
                   w1_ref, b1_ref, w2_ref, b2_ref, o_ref):
    """Fused: pre-proj matmul -> LayerNorm -> Linear+ReLU -> Linear."""
    # video_pre_proj (no bias): bf16 operands, f32 accumulation on the MXU.
    y = jnp.dot(x_ref[...], wpre_ref[...], preferred_element_type=jnp.float32)

    # LayerNorm over last dim (biased variance, eps=1e-5), affine -- f32 math.
    mean = jnp.mean(y, axis=-1, keepdims=True)
    diff = y - mean
    var = jnp.mean(diff * diff, axis=-1, keepdims=True)
    z = diff * jax.lax.rsqrt(var + 1e-5)
    z = z * gamma_ref[...] + beta_ref[...]

    # MLP: Linear -> ReLU -> Linear.  Activations cast to bf16 only for the MXU.
    h = jnp.dot(z.astype(jnp.bfloat16), w1_ref[...],
                preferred_element_type=jnp.float32)
    h = jnp.maximum(h + b1_ref[...], 0.0)
    out = jnp.dot(h.astype(jnp.bfloat16), w2_ref[...],
                  preferred_element_type=jnp.float32)
    out = out + b2_ref[...]

    o_ref[...] = out.astype(o_ref.dtype)


@functools.partial(jax.jit,
                   static_argnames=("tm", "single_buffer_weights", "out_dtype"))
def _vi_mlp_call(x2d, w_pre_t, ln_gamma, ln_beta, w1_t, b1, w2_t, b2, *,
                 tm, single_buffer_weights, out_dtype):
    M_pad, D = x2d.shape
    grid = (M_pad // tm,)

    row = lambda i: (i, 0)
    full = lambda i: (0, 0)

    # Constant blocks (weights / LN params / biases) never change across the
    # grid, so single-buffer them to halve their VMEM footprint.
    const_kwargs = {"pipeline_mode": pl.Buffered(1)} if single_buffer_weights else {}

    def const_spec(shape):
        return pl.BlockSpec(shape, full, **const_kwargs)

    # Explicit VMEM budget (per-generation safe: <= 60 MiB fits v7x's 64 MiB
    # physical; >= 32 MiB covers compiler internal scratch on v5e/v6e).
    weight_bufs = 1 if single_buffer_weights else 2
    vmem_bytes = (3 * D * D * 2 * weight_bufs          # bf16 weights, resident
                  + 2 * 4 * D * 4                      # f32 gamma/beta/b1/b2
                  + 2 * tm * D * (2 + 4)               # double-buffered x + out tiles
                  + 8 * tm * D * 4)                    # f32 intermediates / spill headroom
    vmem_limit = int(min(max(vmem_bytes + (2 << 20), 32 << 20), 60 << 20))

    return pl.pallas_call(
        _vi_mlp_kernel,
        out_shape=jax.ShapeDtypeStruct((M_pad, D), out_dtype),
        grid_spec=pltpu.PrefetchScalarGridSpec(
            num_scalar_prefetch=0,
            grid=grid,
            in_specs=[
                pl.BlockSpec((tm, D), row),   # x tile (bf16)
                const_spec((D, D)),           # W_pre^T (bf16)
                const_spec((1, D)),           # LN gamma (f32)
                const_spec((1, D)),           # LN beta  (f32)
                const_spec((D, D)),           # W1^T (bf16)
                const_spec((1, D)),           # b1 (f32)
                const_spec((D, D)),           # W2^T (bf16)
                const_spec((1, D)),           # b2 (f32)
            ],
            out_specs=pl.BlockSpec((tm, D), row),
        ),
        compiler_params=pltpu.CompilerParams(
            dimension_semantics=("parallel",),
            vmem_limit_bytes=vmem_limit),
    )(x2d, w_pre_t, ln_gamma, ln_beta, w1_t, b1, w2_t, b2)


def view_invariant_mlp_forward(video_embed, params, tile_m=256):
    """video_embed: [B, T, D].  Returns dict matching the torch module."""
    B, T, D = video_embed.shape
    M = B * T

    # Pick the row tile: as large as requested (amortizes ~0.35us/step pipeline
    # overhead and fills the MXU), but never larger than the (8-aligned) row
    # count.  Pad rows up to a tile multiple instead of asserting.
    tm = min(_round_up(tile_m, 8), _round_up(M, 8))
    M_pad = _round_up(M, tm)
    if M_pad // tm < 2 and M > 8:
        # Keep >= 2 grid steps so the "parallel" axis can shard across v7x's
        # two TensorCores.
        tm = max(8, _round_up((M + 1) // 2, 8))
        M_pad = _round_up(M, tm)

    x2d = video_embed.reshape(M, D).astype(jnp.bfloat16)
    if M_pad != M:
        x2d = jnp.pad(x2d, ((0, M_pad - M), (0, 0)))

    args = (x2d, params["w_pre_t"], params["ln_gamma"], params["ln_beta"],
            params["w1_t"], params["b1"], params["w2_t"], params["b2"])
    try:
        out2d = _vi_mlp_call(*args, tm=tm, single_buffer_weights=True,
                             out_dtype=video_embed.dtype)
    except Exception:
        # Fallback if pipeline_mode=pl.Buffered(1) is unsupported in this JAX
        # version: identical kernel, default (double) buffering.
        out2d = _vi_mlp_call(*args, tm=tm, single_buffer_weights=False,
                             out_dtype=video_embed.dtype)

    out = out2d[:M].reshape(B, T, D)
    return {"low_dim_features": out, "high_dim_features": out}


def init_params(key, video_embed_dim):
    """Deterministic init mirroring ViewInvariantMLP.initialize_parameters():
    linear weights ~ N(0, 0.01), biases = 0, LayerNorm gamma=1 beta=0.
    Matmul weights are stored transposed ([in, out]) and in bf16 for the MXU."""
    D = video_embed_dim
    k0, k1, k2 = jax.random.split(key, 3)
    w_pre = 0.01 * jax.random.normal(k0, (D, D), jnp.float32)
    w1 = 0.01 * jax.random.normal(k1, (D, D), jnp.float32)
    w2 = 0.01 * jax.random.normal(k2, (D, D), jnp.float32)
    return {
        "w_pre_t": w_pre.T.astype(jnp.bfloat16),
        "ln_gamma": jnp.ones((1, D), jnp.float32),
        "ln_beta": jnp.zeros((1, D), jnp.float32),
        "w1_t": w1.T.astype(jnp.bfloat16),
        "b1": jnp.zeros((1, D), jnp.float32),
        "w2_t": w2.T.astype(jnp.bfloat16),
        "b2": jnp.zeros((1, D), jnp.float32),
    }


def _reference(video_embed, params):
    """Pure-JAX f32 reference (weights cast up) for correctness check."""
    x = video_embed.astype(jnp.float32)
    w_pre = params["w_pre_t"].astype(jnp.float32)
    w1 = params["w1_t"].astype(jnp.float32)
    w2 = params["w2_t"].astype(jnp.float32)
    y = x @ w_pre
    mean = jnp.mean(y, axis=-1, keepdims=True)
    var = jnp.mean((y - mean) ** 2, axis=-1, keepdims=True)
    z = (y - mean) / jnp.sqrt(var + 1e-5) * params["ln_gamma"][0] + params["ln_beta"][0]
    h = jnp.maximum(z @ w1 + params["b1"][0], 0.0)
    return h @ w2 + params["b2"][0]


if __name__ == "__main__":
    # Small shapes consistent with the module: batch=2, seq=8, embed_dim=256.
    B, T, D = 2, 8, 256
    key = jax.random.PRNGKey(0)
    k_param, k_x = jax.random.split(key)

    params = init_params(k_param, D)
    video_embed = jax.random.normal(k_x, (B, T, D), jnp.float32)
    # Padding masks / lang embeds are unused by this module's forward path.
    lang_embed = jnp.zeros((B, 4, D), jnp.float32)
    video_padding_mask = jnp.zeros((B, T), jnp.bool_)
    lang_padding_mask = jnp.zeros((B, 4), jnp.bool_)

    out = view_invariant_mlp_forward(video_embed, params)
    jax.block_until_ready(out)

    ref = _reference(video_embed, params)
    assert out["low_dim_features"].shape == (B, T, D)
    assert out["high_dim_features"].shape == (B, T, D)
    # bf16 MXU operands => looser tolerance than the pure-f32 version.
    assert jnp.allclose(out["low_dim_features"], ref, atol=1e-2, rtol=5e-2)
    assert jnp.allclose(out["high_dim_features"], ref, atol=1e-2, rtol=5e-2)

    print("KERNEL_OK")
</pallas_src>

<mosaic_0001>
module attributes {stable_mosaic.version = 11 : i64} {
  func.func @_vi_mlp_kernel(%arg0: i32, %arg1: memref<8x256xbf16, #tpu.memory_space<vmem>>, %arg2: memref<256x256xbf16, #tpu.memory_space<vmem>>, %arg3: memref<1x256xf32, #tpu.memory_space<vmem>>, %arg4: memref<1x256xf32, #tpu.memory_space<vmem>>, %arg5: memref<256x256xbf16, #tpu.memory_space<vmem>>, %arg6: memref<1x256xf32, #tpu.memory_space<vmem>>, %arg7: memref<256x256xbf16, #tpu.memory_space<vmem>>, %arg8: memref<1x256xf32, #tpu.memory_space<vmem>>, %arg9: memref<8x256xf32, #tpu.memory_space<vmem>>) attributes {dimension_semantics = [#tpu.dimension_semantics<parallel>], iteration_bounds = array<i64: 2>, scalar_prefetch = 0 : i64, scratch_operands = 0 : i64, tpu.core_type = #tpu.core_type<tc>, window_params = [{transform_indices = @transform_0, window_bounds = array<i64: 8, 256>}, {pipeline_mode = #tpu.pipeline_mode<synchronous>, transform_indices = @transform_1, window_bounds = array<i64: 256, 256>}, {pipeline_mode = #tpu.pipeline_mode<synchronous>, transform_indices = @transform_2, window_bounds = array<i64: 1, 256>}, {pipeline_mode = #tpu.pipeline_mode<synchronous>, transform_indices = @transform_3, window_bounds = array<i64: 1, 256>}, {pipeline_mode = #tpu.pipeline_mode<synchronous>, transform_indices = @transform_4, window_bounds = array<i64: 256, 256>}, {pipeline_mode = #tpu.pipeline_mode<synchronous>, transform_indices = @transform_5, window_bounds = array<i64: 1, 256>}, {pipeline_mode = #tpu.pipeline_mode<synchronous>, transform_indices = @transform_6, window_bounds = array<i64: 256, 256>}, {pipeline_mode = #tpu.pipeline_mode<synchronous>, transform_indices = @transform_7, window_bounds = array<i64: 1, 256>}, {transform_indices = @transform_8, window_bounds = array<i64: 8, 256>}]} {
    %c0 = arith.constant 0 : index
    %c0_0 = arith.constant 0 : index
    %0 = vector.load %arg1[%c0, %c0_0] : memref<8x256xbf16, #tpu.memory_space<vmem>>, vector<8x256xbf16>
    %c0_1 = arith.constant 0 : index
    %c0_2 = arith.constant 0 : index
    %1 = vector.load %arg2[%c0_1, %c0_2] : memref<256x256xbf16, #tpu.memory_space<vmem>>, vector<256x256xbf16>
    %cst = arith.constant dense<0.000000e+00> : vector<8x256xf32>
    %2 = tpu.matmul %0, %1, %cst {dimension_numbers = #tpu.dot_dimension_numbers<[1], [0], [0], [1], [0, 0, 1, 1], [], []>} : vector<8x256xbf16>, vector<256x256xbf16>, vector<8x256xf32> -> vector<8x256xf32>
    %cst_3 = arith.constant dense<0.000000e+00> : vector<8xf32>
    %3 = vector.multi_reduction <add>, %2, %cst_3 [1] : vector<8x256xf32> to vector<8xf32>
    %4 = vector.shape_cast %3 : vector<8xf32> to vector<8x1xf32>
    %cst_4 = arith.constant 2.560000e+02 : f32
    %5 = vector.broadcast %cst_4 : f32 to vector<8x1xf32>
    %6 = arith.divf %4, %5 : vector<8x1xf32>
    %7 = vector.broadcast %6 : vector<8x1xf32> to vector<8x256xf32>
    %8 = arith.subf %2, %7 : vector<8x256xf32>
    %9 = arith.mulf %8, %8 : vector<8x256xf32>
    %cst_5 = arith.constant dense<0.000000e+00> : vector<8xf32>
    %10 = vector.multi_reduction <add>, %9, %cst_5 [1] : vector<8x256xf32> to vector<8xf32>
    %11 = vector.shape_cast %10 : vector<8xf32> to vector<8x1xf32>
    %cst_6 = arith.constant 2.560000e+02 : f32
    %12 = vector.broadcast %cst_6 : f32 to vector<8x1xf32>
    %13 = arith.divf %11, %12 : vector<8x1xf32>
    %cst_7 = arith.constant 9.99999974E-6 : f32
    %14 = vector.broadcast %cst_7 : f32 to vector<8x1xf32>
    %15 = arith.addf %13, %14 : vector<8x1xf32>
    %16 = math.rsqrt %15 : vector<8x1xf32>
    %17 = vector.broadcast %16 : vector<8x1xf32> to vector<8x256xf32>
    %18 = arith.mulf %8, %17 : vector<8x256xf32>
    %c0_8 = arith.constant 0 : index
    %c0_9 = arith.constant 0 : index
    %19 = vector.load %arg3[%c0_8, %c0_9] : memref<1x256xf32, #tpu.memory_space<vmem>>, vector<1x256xf32>
    %20 = vector.broadcast %19 : vector<1x256xf32> to vector<8x256xf32>
    %21 = arith.mulf %18, %20 : vector<8x256xf32>
    %c0_10 = arith.constant 0 : index
    %c0_11 = arith.constant 0 : index
    %22 = vector.load %arg4[%c0_10, %c0_11] : memref<1x256xf32, #tpu.memory_space<vmem>>, vector<1x256xf32>
    %23 = vector.broadcast %22 : vector<1x256xf32> to vector<8x256xf32>
    %24 = arith.addf %21, %23 : vector<8x256xf32>
    %25 = arith.truncf %24 : vector<8x256xf32> to vector<8x256xbf16>
    %c0_12 = arith.constant 0 : index
    %c0_13 = arith.constant 0 : index
    %26 = vector.load %arg5[%c0_12, %c0_13] : memref<256x256xbf16, #tpu.memory_space<vmem>>, vector<256x256xbf16>
    %cst_14 = arith.constant dense<0.000000e+00> : vector<8x256xf32>
    %27 = tpu.matmul %25, %26, %cst_14 {dimension_numbers = #tpu.dot_dimension_numbers<[1], [0], [0], [1], [0, 0, 1, 1], [], []>} : vector<8x256xbf16>, vector<256x256xbf16>, vector<8x256xf32> -> vector<8x256xf32>
    %c0_15 = arith.constant 0 : index
    %c0_16 = arith.constant 0 : index
    %28 = vector.load %arg6[%c0_15, %c0_16] : memref<1x256xf32, #tpu.memory_space<vmem>>, vector<1x256xf32>
    %29 = vector.broadcast %28 : vector<1x256xf32> to vector<8x256xf32>
    %30 = arith.addf %27, %29 : vector<8x256xf32>
    %cst_17 = arith.constant 0.000000e+00 : f32
    %31 = vector.broadcast %cst_17 : f32 to vector<8x256xf32>
    %32 = arith.maximumf %30, %31 : vector<8x256xf32>
    %33 = arith.truncf %32 : vector<8x256xf32> to vector<8x256xbf16>
    %c0_18 = arith.constant 0 : index
    %c0_19 = arith.constant 0 : index
    %34 = vector.load %arg7[%c0_18, %c0_19] : memref<256x256xbf16, #tpu.memory_space<vmem>>, vector<256x256xbf16>
    %cst_20 = arith.constant dense<0.000000e+00> : vector<8x256xf32>
    %35 = tpu.matmul %33, %34, %cst_20 {dimension_numbers = #tpu.dot_dimension_numbers<[1], [0], [0], [1], [0, 0, 1, 1], [], []>} : vector<8x256xbf16>, vector<256x256xbf16>, vector<8x256xf32> -> vector<8x256xf32>
    %c0_21 = arith.constant 0 : index
    %c0_22 = arith.constant 0 : index
    %36 = vector.load %arg8[%c0_21, %c0_22] : memref<1x256xf32, #tpu.memory_space<vmem>>, vector<1x256xf32>
    %37 = vector.broadcast %36 : vector<1x256xf32> to vector<8x256xf32>
    %38 = arith.addf %35, %37 : vector<8x256xf32>
    %c0_23 = arith.constant 0 : index
    %c0_24 = arith.constant 0 : index
    %39 = vector.load %arg9[%c0_23, %c0_24] : memref<8x256xf32, #tpu.memory_space<vmem>>, vector<8x256xf32>
    tpu.vector_store %arg9[%c0_23, %c0_24], %38 {strides = array<i32>} : memref<8x256xf32, #tpu.memory_space<vmem>>, vector<8x256xf32>,
    return
  }
  func.func @transform_0(%arg0: i32) -> (i32, i32) {
    %c0_i32 = arith.constant 0 : i32
    %c0_i32_0 = arith.constant 0 : i32
    return %arg0, %c0_i32 : i32, i32
  }
  func.func @transform_1(%arg0: i32) -> (i32, i32) {
    %c0_i32 = arith.constant 0 : i32
    %c0_i32_0 = arith.constant 0 : i32
    %c0_i32_1 = arith.constant 0 : i32
    return %c0_i32, %c0_i32_0 : i32, i32
  }
  func.func @transform_2(%arg0: i32) -> (i32, i32) {
    %c0_i32 = arith.constant 0 : i32
    %c0_i32_0 = arith.constant 0 : i32
    %c0_i32_1 = arith.constant 0 : i32
    return %c0_i32, %c0_i32_0 : i32, i32
  }
  func.func @transform_3(%arg0: i32) -> (i32, i32) {
    %c0_i32 = arith.constant 0 : i32
    %c0_i32_0 = arith.constant 0 : i32
    %c0_i32_1 = arith.constant 0 : i32
    return %c0_i32, %c0_i32_0 : i32, i32
  }
  func.func @transform_4(%arg0: i32) -> (i32, i32) {
    %c0_i32 = arith.constant 0 : i32
    %c0_i32_0 = arith.constant 0 : i32
    %c0_i32_1 = arith.constant 0 : i32
    return %c0_i32, %c0_i32_0 : i32, i32
  }
  func.func @transform_5(%arg0: i32) -> (i32, i32) {
    %c0_i32 = arith.constant 0 : i32
    %c0_i32_0 = arith.constant 0 : i32
    %c0_i32_1 = arith.constant 0 : i32
    return %c0_i32, %c0_i32_0 : i32, i32
  }
  func.func @transform_6(%arg0: i32) -> (i32, i32) {
    %c0_i32 = arith.constant 0 : i32
    %c0_i32_0 = arith.constant 0 : i32
    %c0_i32_1 = arith.constant 0 : i32
    return %c0_i32, %c0_i32_0 : i32, i32
  }
  func.func @transform_7(%arg0: i32) -> (i32, i32) {
    %c0_i32 = arith.constant 0 : i32
    %c0_i32_0 = arith.constant 0 : i32
    %c0_i32_1 = arith.constant 0 : i32
    return %c0_i32, %c0_i32_0 : i32, i32
  }
  func.func @transform_8(%arg0: i32) -> (i32, i32) {
    %c0_i32 = arith.constant 0 : i32
    %c0_i32_0 = arith.constant 0 : i32
    return %arg0, %c0_i32 : i32, i32
  }
}

module attributes {stable_mosaic.version = 11 : i64} {
  func.func @_vi_mlp_kernel(%arg0: i32, %arg1: memref<8x256xbf16, #tpu.memory_space<vmem>>, %arg2: memref<256x256xbf16, #tpu.memory_space<vmem>>, %arg3: memref<1x256xf32, #tpu.memory_space<vmem>>, %arg4: memref<1x256xf32, #tpu.memory_space<vmem>>, %arg5: memref<256x256xbf16, #tpu.memory_space<vmem>>, %arg6: memref<1x256xf32, #tpu.memory_space<vmem>>, %arg7: memref<256x256xbf16, #tpu.memory_space<vmem>>, %arg8: memref<1x256xf32, #tpu.memory_space<vmem>>, %arg9: memref<8x256xf32, #tpu.memory_space<vmem>>) attributes {dimension_semantics = [#tpu.dimension_semantics<parallel>], iteration_bounds = array<i64: 2>, scalar_prefetch = 0 : i64, scratch_operands = 0 : i64, tpu.core_type = #tpu.core_type<tc>, window_params = [{transform_indices = @transform_0, window_bounds = array<i64: 8, 256>}, {pipeline_mode = #tpu.pipeline_mode<synchronous>, transform_indices = @transform_1, window_bounds = array<i64: 256, 256>}, {pipeline_mode = #tpu.pipeline_mode<synchronous>, transform_indices = @transform_2, window_bounds = array<i64: 1, 256>}, {pipeline_mode = #tpu.pipeline_mode<synchronous>, transform_indices = @transform_3, window_bounds = array<i64: 1, 256>}, {pipeline_mode = #tpu.pipeline_mode<synchronous>, transform_indices = @transform_4, window_bounds = array<i64: 256, 256>}, {pipeline_mode = #tpu.pipeline_mode<synchronous>, transform_indices = @transform_5, window_bounds = array<i64: 1, 256>}, {pipeline_mode = #tpu.pipeline_mode<synchronous>, transform_indices = @transform_6, window_bounds = array<i64: 256, 256>}, {pipeline_mode = #tpu.pipeline_mode<synchronous>, transform_indices = @transform_7, window_bounds = array<i64: 1, 256>}, {transform_indices = @transform_8, window_bounds = array<i64: 8, 256>}]} {
    %c0 = arith.constant 0 : index
    %c0_0 = arith.constant 0 : index
    %0 = vector.load %arg1[%c0, %c0_0] : memref<8x256xbf16, #tpu.memory_space<vmem>>, vector<8x256xbf16>
    %c0_1 = arith.constant 0 : index
    %c0_2 = arith.constant 0 : index
    %1 = vector.load %arg2[%c0_1, %c0_2] : memref<256x256xbf16, #tpu.memory_space<vmem>>, vector<256x256xbf16>
    %cst = arith.constant dense<0.000000e+00> : vector<8x256xf32>
    %2 = tpu.matmul %0, %1, %cst {dimension_numbers = #tpu.dot_dimension_numbers<[1], [0], [0], [1], [0, 0, 1, 1], [], []>} : vector<8x256xbf16>, vector<256x256xbf16>, vector<8x256xf32> -> vector<8x256xf32>
    %cst_3 = arith.constant dense<0.000000e+00> : vector<8xf32>
    %3 = vector.multi_reduction <add>, %2, %cst_3 [1] : vector<8x256xf32> to vector<8xf32>
    %4 = vector.shape_cast %3 : vector<8xf32> to vector<8x1xf32>
    %cst_4 = arith.constant 2.560000e+02 : f32
    %5 = vector.broadcast %cst_4 : f32 to vector<8x1xf32>
    %6 = arith.divf %4, %5 : vector<8x1xf32>
    %7 = vector.broadcast %6 : vector<8x1xf32> to vector<8x256xf32>
    %8 = arith.subf %2, %7 : vector<8x256xf32>
    %9 = arith.mulf %8, %8 : vector<8x256xf32>
    %cst_5 = arith.constant dense<0.000000e+00> : vector<8xf32>
    %10 = vector.multi_reduction <add>, %9, %cst_5 [1] : vector<8x256xf32> to vector<8xf32>
    %11 = vector.shape_cast %10 : vector<8xf32> to vector<8x1xf32>
    %cst_6 = arith.constant 2.560000e+02 : f32
    %12 = vector.broadcast %cst_6 : f32 to vector<8x1xf32>
    %13 = arith.divf %11, %12 : vector<8x1xf32>
    %cst_7 = arith.constant 9.99999974E-6 : f32
    %14 = vector.broadcast %cst_7 : f32 to vector<8x1xf32>
    %15 = arith.addf %13, %14 : vector<8x1xf32>
    %16 = math.rsqrt %15 : vector<8x1xf32>
    %17 = vector.broadcast %16 : vector<8x1xf32> to vector<8x256xf32>
    %18 = arith.mulf %8, %17 : vector<8x256xf32>
    %c0_8 = arith.constant 0 : index
    %c0_9 = arith.constant 0 : index
    %19 = vector.load %arg3[%c0_8, %c0_9] : memref<1x256xf32, #tpu.memory_space<vmem>>, vector<1x256xf32>
    %20 = vector.broadcast %19 : vector<1x256xf32> to vector<8x256xf32>
    %21 = arith.mulf %18, %20 : vector<8x256xf32>
    %c0_10 = arith.constant 0 : index
    %c0_11 = arith.constant 0 : index
    %22 = vector.load %arg4[%c0_10, %c0_11] : memref<1x256xf32, #tpu.memory_space<vmem>>, vector<1x256xf32>
    %23 = vector.broadcast %22 : vector<1x256xf32> to vector<8x256xf32>
    %24 = arith.addf %21, %23 : vector<8x256xf32>
    %25 = arith.truncf %24 : vector<8x256xf32> to vector<8x256xbf16>
    %c0_12 = arith.constant 0 : index
    %c0_13 = arith.constant 0 : index
    %26 = vector.load %arg5[%c0_12, %c0_13] : memref<256x256xbf16, #tpu.memory_space<vmem>>, vector<256x256xbf16>
    %cst_14 = arith.constant dense<0.000000e+00> : vector<8x256xf32>
    %27 = tpu.matmul %25, %26, %cst_14 {dimension_numbers = #tpu.dot_dimension_numbers<[1], [0], [0], [1], [0, 0, 1, 1], [], []>} : vector<8x256xbf16>, vector<256x256xbf16>, vector<8x256xf32> -> vector<8x256xf32>
    %c0_15 = arith.constant 0 : index
    %c0_16 = arith.constant 0 : index
    %28 = vector.load %arg6[%c0_15, %c0_16] : memref<1x256xf32, #tpu.memory_space<vmem>>, vector<1x256xf32>
    %29 = vector.broadcast %28 : vector<1x256xf32> to vector<8x256xf32>
    %30 = arith.addf %27, %29 : vector<8x256xf32>
    %cst_17 = arith.constant 0.000000e+00 : f32
    %31 = vector.broadcast %cst_17 : f32 to vector<8x256xf32>
    %32 = arith.maximumf %30, %31 : vector<8x256xf32>
    %33 = arith.truncf %32 : vector<8x256xf32> to vector<8x256xbf16>
    %c0_18 = arith.constant 0 : index
    %c0_19 = arith.constant 0 : index
    %34 = vector.load %arg7[%c0_18, %c0_19] : memref<256x256xbf16, #tpu.memory_space<vmem>>, vector<256x256xbf16>
    %cst_20 = arith.constant dense<0.000000e+00> : vector<8x256xf32>
    %35 = tpu.matmul %33, %34, %cst_20 {dimension_numbers = #tpu.dot_dimension_numbers<[1], [0], [0], [1], [0, 0, 1, 1], [], []>} : vector<8x256xbf16>, vector<256x256xbf16>, vector<8x256xf32> -> vector<8x256xf32>
    %c0_21 = arith.constant 0 : index
    %c0_22 = arith.constant 0 : index
    %36 = vector.load %arg8[%c0_21, %c0_22] : memref<1x256xf32, #tpu.memory_space<vmem>>, vector<1x256xf32>
    %37 = vector.broadcast %36 : vector<1x256xf32> to vector<8x256xf32>
    %38 = arith.addf %35, %37 : vector<8x256xf32>
    %c0_23 = arith.constant 0 : index
    %c0_24 = arith.constant 0 : index
    %39 = vector.load %arg9[%c0_23, %c0_24] : memref<8x256xf32, #tpu.memory_space<vmem>>, vector<8x256xf32>
    tpu.vector_store %arg9[%c0_23, %c0_24], %38 {strides = array<i32>} : memref<8x256xf32, #tpu.memory_space<vmem>>, vector<8x256xf32>,
    return
  }
  func.func @transform_0(%arg0: i32) -> (i32, i32) {
    %c0_i32 = arith.constant 0 : i32
    %c0_i32_0 = arith.constant 0 : i32
    return %arg0, %c0_i32 : i32, i32
  }
  func.func @transform_1(%arg0: i32) -> (i32, i32) {
    %c0_i32 = arith.constant 0 : i32
    %c0_i32_0 = arith.constant 0 : i32
    %c0_i32_1 = arith.constant 0 : i32
    return %c0_i32, %c0_i32_0 : i32, i32
  }
  func.func @transform_2(%arg0: i32) -> (i32, i32) {
    %c0_i32 = arith.constant 0 : i32
    %c0_i32_0 = arith.constant 0 : i32
    %c0_i32_1 = arith.constant 0 : i32
    return %c0_i32, %c0_i32_0 : i32, i32
  }
  func.func @transform_3(%arg0: i32) -> (i32, i32) {
    %c0_i32 = arith.constant 0 : i32
    %c0_i32_0 = arith.constant 0 : i32
    %c0_i32_1 = arith.constant 0 : i32
    return %c0_i32, %c0_i32_0 : i32, i32
  }
  func.func @transform_4(%arg0: i32) -> (i32, i32) {
    %c0_i32 = arith.constant 0 : i32
    %c0_i32_0 = arith.constant 0 : i32
    %c0_i32_1 = arith.constant 0 : i32
    return %c0_i32, %c0_i32_0 : i32, i32
  }
  func.func @transform_5(%arg0: i32) -> (i32, i32) {
    %c0_i32 = arith.constant 0 : i32
    %c0_i32_0 = arith.constant 0 : i32
    %c0_i32_1 = arith.constant 0 : i32
    return %c0_i32, %c0_i32_0 : i32, i32
  }
  func.func @transform_6(%arg0: i32) -> (i32, i32) {
    %c0_i32 = arith.constant 0 : i32
    %c0_i32_0 = arith.constant 0 : i32
    %c0_i32_1 = arith.constant 0 : i32
    return %c0_i32, %c0_i32_0 : i32, i32
  }
  func.func @transform_7(%arg0: i32) -> (i32, i32) {
    %c0_i32 = arith.constant 0 : i32
    %c0_i32_0 = arith.constant 0 : i32
    %c0_i32_1 = arith.constant 0 : i32
    return %c0_i32, %c0_i32_0 : i32, i32
  }
  func.func @transform_8(%arg0: i32) -> (i32, i32) {
    %c0_i32 = arith.constant 0 : i32
    %c0_i32_0 = arith.constant 0 : i32
    return %arg0, %c0_i32 : i32, i32
  }
}

</mosaic_0001>

<bundles_post_ra>
// kernel: _vi_mlp_call.1
= control target key start
LH: loop header
LB: loop body
LE: loop exit
PB: predicated region body
PF: predicated region fallthrough
CT: control target
= control target key end

     0   :  { %13 = vsyncpa [#allocation3], 0  ;;  %s2142_s0 = inlined_call_operand.hbm [shape: bf16[16,256], index: 0, kind: input, shape index: {}]   ;;  %s2143_s1 = inlined_call_operand.hbm [shape: bf16[256,256], index: 1, kind: input, shape index: {}]   ;;  %s2144_s2 = inlined_call_operand.vmem [shape: f32[1,256], index: 2, kind: input, shape index: {}]   ;;  %s2145_s3 = inlined_call_operand.vmem [shape: f32[1,256], index: 3, kind: input, shape index: {}]   ;;  %s2146_s4 = inlined_call_operand.hbm [shape: bf16[256,256], index: 4, kind: input, shape index: {}]   ;;  %s2147_s5 = inlined_call_operand.vmem [shape: f32[1,256], index: 5, kind: input, shape index: {}]   ;;  %s2148_s6 = inlined_call_operand.hbm [shape: bf16[256,256], index: 6, kind: input, shape index: {}]   ;;  %s2149_s7 = inlined_call_operand.vmem [shape: f32[1,256], index: 7, kind: input, shape index: {}]   ;;  %s2150_s8 = inlined_call_operand.hbm [shape: f32[16,256], index: 8, kind: output, shape index: {}]  }
   0x1   :  { %15 = vsyncpa [#allocation3 + $0x1], 0 }
   0x2   :  { %16 = vsyncpa [#allocation6], 0 }
   0x3   :  { %17 = vsyncpa [#allocation9], 0 }
   0x4   :  { %18 = vsyncpa [#allocation4], 0 }
   0x5   :  { %20 = vsyncpa [#allocation4 + $0x1], 0  ;;  %s1853_s27 = smov 0   ;;  %s1855_s28 = smov 0  }
   0x6   :  { %s1857_s29 = smov 0   ;;  %s1859_s30 = smov 0  }
   0x7 LB: > { %2156 = sst [smem:[#allocation15_spill]] %s1787_s27  ;;  %s1874_s9 = sadd.s32 4294967295, %s1799_s30   ;;  %s1799_s30 = sphi %s1859_s30, %s2179_s30   ;;  %s1795_s29 = sphi %s1857_s29, %s2178_s29   ;;  %s1791_s28 = sphi %s1855_s28, %s2177_s28   ;;  %s1787_s27 = sphi %s1853_s27, %s2176_s27  }
   0x8   : > { %s1264_s10 = sadd.s32 4294967294, %s1799_s30   ;;  %p46_p0 = scmp.ne.s32.totalorder %s1791_s28, %s1787_s27 }
   0x9   : > { %p2151_p1 = scmp.eq.s32.totalorder %s1874_s9, 0  ;;  %p223_p3 = scmp.eq.s32.totalorder %s1264_s10, 1 }
   0xa   : > { %p1265_p5 = scmp.ge.s32.totalorder %s1799_s30, 1  ;;  %p230_p7 = scmp.lt.s32.totalorder %s1799_s30, 3 }
   0xb   : > { %p1883_p4 = por %p2151_p1, %p46_p0  ;;  %p1888_p6 = por %p223_p3, %p46_p0 }
   0xc   : > { %p1893_p8 = pnand %p1265_p5, %p230_p7  ;;  %s1801_s14 = smov [#allocation5]  }
   0xd   : > { %s2157_s11 = scalar_select %p1883_p4, 1, 0 }
   0xe   : > { %s2158_s12 = scalar_select %p1888_p6, 1, 0 }
   0xf   : > { %s2160_s13 = scalar_select %p1893_p8, 1, 0 }
  0x10   : > { %2159 = sst [smem:[#allocation16_spill]] %s2158_s12  ;;  %s242_s15 = sshll.u32 %s1801_s14, 4  ;;  %s1897_s15 = int_to_ptr.vmem [resolvable:$true] %s242_s15 }
  0x11   : > { %p1400_p9 = pneg %p1893_p8  ;;  %s1802_s17 = smov [#allocation7]  }
  0x12   : > { %s261_s18 = sshll.u32 %s1802_s17, 4  ;;  %s1803_s19 = smov [#allocation8]   ;;  %s1908_s18 = int_to_ptr.vmem [resolvable:$true] %s261_s18 }
  0x13   : > { %p1904_p11 = pnand %p1400_p9, %p2151_p1  ;;  %s1910_s20 = sshll.u32 %s1803_s19, 4  ;;  %s278_s20 = int_to_ptr.vmem [resolvable:$true] %s1910_s20 }
  0x14   : > { %s1611_s23 = scalar_lea.hbm %s2143_s1, 4096 }
  0x15   : > { %p1612_p12 = scmp.ne.s32.totalorder %s2143_s1, %s1611_s23  ;;  %p1920_p13 = pneg %p1904_p11 }
  0x16   : > { %p1618_p5 = scmp.lt.u32.totalorder %s1611_s23, %s2143_s1 }
  0x17   : > { %p1614_p0 = pnand %p1920_p13, %p1612_p12 }
  0x19   : > { %p1615_p3 = pneg %p1614_p0 }
  0x1b   : > { %p1620_p7 = pnand %p1618_p5, %p1615_p3 }
  0x1d   : > { %1623 = shalt.err (!%p1620_p7)
}
  0x1e   : > { %s1624_s17 = scalar_lea.vmem %s1897_s15, 4096  ;;  %p1632_p2 = scmp.lt.s32.totalorder %s1897_s15, %s1897_s15 }
  0x1f   : > { %p1625_p9 = scmp.ne.s32.totalorder %s1897_s15, %s1624_s17  ;;  %p1633_p6 = scmp.lt.s32.totalorder %s1624_s17, %s1624_s17 }
  0x21   : > { %p1627_p10 = pnand %p1625_p9, %p1920_p13  ;;  %p1634_p12 = por %p1633_p6, %p1632_p2 }
  0x23   : > { %p1628_p1 = pneg %p1627_p10 }
  0x25   : > { %p1635_p0 = pnand %p1634_p12, %p1628_p1 }
  0x27   : > { %1638 = shalt.err (!%p1635_p0)
}
  0x28   : > { %s1804_s19 = smov 128   ;;  %s1805_s21 = smov 8  }
  0x29   : > { %1403 = dma.hbm_to_vmem [thread:$0]  (!%p1904_p11), %s2143_s1, 4096, %s1897_s15, [#allocation6], %s1804_s19, %s1804_s19, %s1805_s21  }
  0x2a   : > { %s1639_s10 = scalar_lea.hbm %s2146_s4, 4096 }
  0x2b   : > { %p1640_p1 = scmp.ne.s32.totalorder %s2146_s4, %s1639_s10  ;;  %p1646_p10 = scmp.lt.u32.totalorder %s1639_s10, %s2146_s4 }
  0x2d   : > { %p1642_p2 = pnand %p1640_p1, %p1920_p13 }
  0x2f   : > { %p1643_p6 = pneg %p1642_p2 }
  0x31   : > { %p1648_p3 = pnand %p1646_p10, %p1643_p6 }
  0x33   : > { %1651 = shalt.err (!%p1648_p3)
}
  0x34   : > { %s1652_s15 = scalar_lea.vmem %s1908_s18, 4096  ;;  %p1660_p12 = scmp.lt.s32.totalorder %s1908_s18, %s1908_s18 }
  0x35   : > { %p1653_p5 = scmp.ne.s32.totalorder %s1908_s18, %s1652_s15  ;;  %p1661_p0 = scmp.lt.s32.totalorder %s1652_s15, %s1652_s15 }
  0x37   : > { %p1655_p7 = pnand %p1653_p5, %p1920_p13  ;;  %p1662_p1 = por %p1661_p0, %p1660_p12 }
  0x39   : > { %p1656_p9 = pneg %p1655_p7 }
  0x3b   : > { %p1663_p2 = pnand %p1662_p1, %p1656_p9 }
  0x3d   : > { %1666 = shalt.err (!%p1663_p2)
}
  0x3e   : > { %1406 = dma.hbm_to_vmem [thread:$0]  (!%p1904_p11), %s2146_s4, 4096, %s1908_s18, [#allocation6], %s1804_s19, %s1804_s19, %s1805_s21  }
  0x3f   : > { %s1667_s24 = scalar_lea.hbm %s2148_s6, 4096 }
  0x40   : > { %p1668_p6 = scmp.ne.s32.totalorder %s2148_s6, %s1667_s24  ;;  %p1674_p5 = scmp.lt.u32.totalorder %s1667_s24, %s2148_s6 }
  0x42   : > { %p1670_p10 = pnand %p1668_p6, %p1920_p13 }
  0x44   : > { %p1671_p3 = pneg %p1670_p10 }
  0x46   : > { %p1676_p7 = pnand %p1674_p5, %p1671_p3 }
  0x48   : > { %1679 = shalt.err (!%p1676_p7)
}
  0x49   : > { %s1680_s15 = scalar_lea.vmem %s278_s20, 4096  ;;  %p1688_p1 = scmp.lt.s32.totalorder %s278_s20, %s278_s20 }
  0x4a   : > { %p1681_p9 = scmp.ne.s32.totalorder %s278_s20, %s1680_s15  ;;  %p1689_p2 = scmp.lt.s32.totalorder %s1680_s15, %s1680_s15 }
  0x4c   : > { %p1683_p12 = pnand %p1681_p9, %p1920_p13  ;;  %p1690_p4 = por %p1689_p2, %p1688_p1 }
  0x4e   : > { %p1684_p0 = pneg %p1683_p12 }
  0x50   : > { %p1691_p8 = pnand %p1690_p4, %p1684_p0 }
  0x52   : > { %1694 = shalt.err (!%p1691_p8)
}
  0x53   : > { %1409 = dma.hbm_to_vmem [thread:$0]  (!%p1904_p11), %s2148_s6, 4096, %s278_s20, [#allocation9], %s1804_s19, %s1804_s19, %s1805_s21  }
  0x54   : > { %s1993_s26 = sadd.s32 1, %s1799_s30   ;;  %s33_s12 = sadd.s32 1, %s1795_s29 }
  0x55   : > { %s30_s16 = ssub.s32 %s1799_s30, %s1993_s26  ;;  %p40_p8 = scmp.ne.s32.totalorder %s1795_s29, %s1791_s28 }
  0x56   : > { %p31_p4 = scmp.eq.s32.totalorder %s30_s16, 0  ;;  %p41_p13 = scmp.eq.s32.totalorder %s1799_s30, 0 }
  0x57   : > { %p1421_p6 = scmp.lt.s32.totalorder %s1799_s30, 2  ;;  %p2163_p3 = scmp.eq.s32.totalorder %s1874_s9, 1 }
  0x58   : > { %s2003_s22 = scalar_select %p31_p4, %s1795_s29, %s33_s12  }
  0x59   : > { %p42_p10 = por %p41_p13, %p40_p8  ;;  %p2007_p5 = por %p2163_p3, %p40_p8 }
  0x5a   : > { %s294_s24 = sand.u32 1, %s1795_s29   ;;  %s1382_s25 = sshll.u32 %s1799_s30, 7 }
  0x5b   : > { %s1270_s20 = sshll.u32 %s294_s24, 3  ;;  %s2016_s10 = scalar_lea.hbm %s2142_s0, %s1382_s25 }
  0x5c   : > { %s298_s14 = scalar_lea.vmem [#allocation2], %s1270_s20  ;;  %p2018_p11 = pnand %p1421_p6, %p42_p10 }
  0x5d   : > { %s306_s17 = sshll.u32 %s298_s14, 4  ;;  %s295_s18 = scalar_lea.sflag [#allocation3], %s294_s24  ;;  %s2022_s17 = int_to_ptr.vmem [resolvable:$true] %s306_s17 }
  0x5e   : > { %s1695_s27 = scalar_lea.hbm %s2016_s10, 128  ;;  %p1697_p9 = pneg %p2018_p11 }
  0x5f   : > { %p1696_p7 = scmp.ne.s32.totalorder %s2016_s10, %s1695_s27  ;;  %s1700_s25 = scalar_lea.hbm %s2142_s0, 256 }
  0x60   : > { %p1701_p1 = scmp.lt.u32.totalorder %s2016_s10, %s2142_s0  ;;  %p1702_p2 = scmp.lt.u32.totalorder %s1700_s25, %s1695_s27 }
  0x61   : > { %p1698_p12 = pnand %p1697_p9, %p1696_p7  ;;  %p1704_p8 = scmp.lt.u32.totalorder %s1695_s27, %s2016_s10 }
  0x62   : > { %p1703_p4 = por %p1702_p2, %p1701_p1 }
  0x63   : > { %p1699_p0 = pneg %p1698_p12 }
  0x64   : > { %p1705_p13 = por %p1704_p8, %p1703_p4 }
  0x66   : > { %p1706_p6 = pnand %p1705_p13, %p1699_p0 }
  0x68   : > { %1709 = shalt.err (!%p1706_p6)
}
  0x69   : > { %s1710_s24 = scalar_lea.vmem %s2022_s17, 128  ;;  %s1806_s21 = smov [#allocation2]  }
  0x6a   : > { %p1711_p10 = scmp.ne.s32.totalorder %s2022_s17, %s1710_s24  ;;  %s1715_s14 = sshll.u32 %s1806_s21, 4  ;;  %s1716_s14 = int_to_ptr.vmem [resolvable:$false] %s1715_s14 }
  0x6b   : > { %s1717_s16 = scalar_lea.vmem %s1716_s14, 256  ;;  %p1718_p12 = scmp.lt.s32.totalorder %s2022_s17, %s1716_s14 }
  0x6c   : > { %p1713_p3 = pnand %p1711_p10, %p1697_p9  ;;  %p1719_p1 = scmp.lt.s32.totalorder %s1717_s16, %s1710_s24 }
  0x6e   : > { %p1714_p7 = pneg %p1713_p3  ;;  %p1720_p2 = por %p1719_p1, %p1718_p12 }
  0x70   : > { %p1721_p4 = pnand %p1720_p2, %p1714_p7 }
  0x72   : > { %1724 = shalt.err (!%p1721_p4)
}
  0x73   : > { %1413 = dma.hbm_to_vmem [thread:$0]  (!%p2018_p11), %s2016_s10, 128, %s2022_s17, %s295_s18  }
  0x74   : > { %p2166_p0 = scmp.ne.s32.totalorder %s2160_s13, 0 }
  0x75   : > { %s2052_s27 = sand.u32 (!%p2166_p0), 1, %s1791_s28   ;;  %p2167_p9 = scmp.ne.s32.totalorder (!%p2166_p0), %s2157_s11, 0 }
  0x76   : > { %315 = sbr.rel (%p2166_p0) target bundleno = 1178 (0x49a), region = 52  ;;  %s1274_s12 = sshll.u32 (!%p2166_p0), %s2052_s27, 3 }
  0x77   : > { %s318_s25 = scalar_lea.sflag (!%p2166_p0), [#allocation3], %s2052_s27  ;;  %s2056_s20 = scalar_lea.vmem (!%p2166_p0), [#allocation2], %s1274_s12 }
  0x7d   : > { %1770 = dma.done.wait (%p2167_p9), %s318_s25, 128  }
  0x7e   : > { %1772 = vsyncadd (%p2167_p9), %s318_s25, 4294967168  ;;  %p2168_p11 = scmp.eq.s32.totalorder %s1874_s9, 0 }
  0x80   : > { %1774 = dma.done.wait (%p2168_p11), [#allocation6], 8192   ;;  %p2169_p8 = pmov %p2168_p11 }
  0x82   : > { %1776 = vsyncadd (%p2169_p8), [#allocation6], 4294959104  ;;  %p2170_p13 = pmov %p2169_p8 }
  0x83   : > { %p2171_p6 = pmov %p2169_p8 }
  0x84   : > { %1778 = dma.done.wait (%p2170_p13), [#allocation9], 4096  }
  0x85   : > { %1780 = vsyncadd (%p2171_p6), [#allocation9], 4294963200  ;;  %v1463_v0 = vld [vmem:[#allocation5 + $0x4] ss:$8 sps:$4 sm:$0xff]   ;;  %v1465_v1 = vld [vmem:[#allocation5] ss:$8 sps:$4 sm:$0xff]  }
  0x86   : > { %566 = vmatprep.subr.bf16.mxu0 %v1463_v0  ;;  %v1466_v2 = vld [vmem:[#allocation5 + $0x14] ss:$8 sps:$4 sm:$0xff]   ;;  %v1468_v3 = vld [vmem:[#allocation5 + $0x10] ss:$8 sps:$4 sm:$0xff]   ;;  %v1469_v4 = vld [vmem:[#allocation5 + $0x24] ss:$8 sps:$4 sm:$0xff]  }
  0x87   : > { %567 = vmatpush1.bf16.msra.mxu0 %v1465_v1  ;;  %v1471_v5 = vld [vmem:[#allocation5 + $0x20] ss:$8 sps:$4 sm:$0xff]   ;;  %v1472_v6 = vld [vmem:[#allocation5 + $0x34] ss:$8 sps:$4 sm:$0xff]   ;;  %v1474_v7 = vld [vmem:[#allocation5 + $0x30] ss:$8 sps:$4 sm:$0xff]  }
  0x88   : > { %568 = vmatprep.subr.bf16.mxu0 %v1466_v2  ;;  %v1475_v8 = vld [vmem:[#allocation5 + $0x44] ss:$8 sps:$4 sm:$0xff]   ;;  %v1477_v9 = vld [vmem:[#allocation5 + $0x40] ss:$8 sps:$4 sm:$0xff]   ;;  %v1478_v10 = vld [vmem:[#allocation5 + $0x54] ss:$8 sps:$4 sm:$0xff]  }
  0x89   : > { %v1480_v11 = vld [vmem:[#allocation5 + $0x50] ss:$8 sps:$4 sm:$0xff]   ;;  %v1481_v12 = vld [vmem:[#allocation5 + $0x64] ss:$8 sps:$4 sm:$0xff]   ;;  %v1483_v13 = vld [vmem:[#allocation5 + $0x60] ss:$8 sps:$4 sm:$0xff]  }
  0x8a   : > { %v366_v14 = vld [vmem:[%s2056_s20] sm:$0xff]  ;;  %v1487_v18 = vld [vmem:[#allocation5 + $0x84] ss:$8 sps:$4 sm:$0xff]   ;;  %v1489_v19 = vld [vmem:[#allocation5 + $0x80] ss:$8 sps:$4 sm:$0xff]   ;;  %s1278_s19 = sshll.u32 %s2052_s27, 4 }
  0x8b   : > { %569 = vmatpush1.bf16.msra.mxu0 %v1468_v3  ;;  %v1484_v15 = vld [vmem:[#allocation5 + $0x74] ss:$8 sps:$4 sm:$0xff]   ;;  %v1280_v16 = vcombine.high %v366_v14, %v366_v14  ;;  %v1486_v17 = vld [vmem:[#allocation5 + $0x70] ss:$8 sps:$4 sm:$0xff]   ;;  %v1493_v22 = vld [vmem:[#allocation5 + $0xa4] ss:$8 sps:$4 sm:$0xff]   ;;  %v1279_v34 = vcombine.low %v366_v14, %v366_v14 }
  0x8c   : > { %570 = vmatprep.subr.bf16.mxu0 %v1469_v4  ;;  %v1490_v20 = vld [vmem:[#allocation5 + $0x94] ss:$8 sps:$4 sm:$0xff]   ;;  %v1492_v21 = vld [vmem:[#allocation5 + $0x90] ss:$8 sps:$4 sm:$0xff]   ;;  %v1495_v23 = vld [vmem:[#allocation5 + $0xa0] ss:$8 sps:$4 sm:$0xff]  }
  0x8d   : > { %598 = vmatprep.mubr.bf16.mxu0 %v1280_v16  ;;  %v1496_v24 = vld [vmem:[#allocation5 + $0xb4] ss:$8 sps:$4 sm:$0xff]   ;;  %v1498_v25 = vld [vmem:[#allocation5 + $0xb0] ss:$8 sps:$4 sm:$0xff]   ;;  %v1499_v26 = vld [vmem:[#allocation5 + $0xc4] ss:$8 sps:$4 sm:$0xff]  }
  0x8e   : > { %v1501_v27 = vld [vmem:[#allocation5 + $0xc0] ss:$8 sps:$4 sm:$0xff]   ;;  %v1502_v28 = vld [vmem:[#allocation5 + $0xd4] ss:$8 sps:$4 sm:$0xff]   ;;  %v1504_v29 = vld [vmem:[#allocation5 + $0xd0] ss:$8 sps:$4 sm:$0xff]  }
  0x8f   : > { %571 = vmatpush1.bf16.msra.mxu0 %v1471_v5  ;;  %v1505_v30 = vld [vmem:[#allocation5 + $0xe4] ss:$8 sps:$4 sm:$0xff]   ;;  %v1507_v31 = vld [vmem:[#allocation5 + $0xe0] ss:$8 sps:$4 sm:$0xff]   ;;  %v1508_v32 = vld [vmem:[#allocation5 + $0xf4] ss:$8 sps:$4 sm:$0xff]  }
  0x90   : > { %572 = vmatprep.subr.bf16.mxu0 %v1472_v6  ;;  %v1510_v33 = vld [vmem:[#allocation5 + $0xf0] ss:$8 sps:$4 sm:$0xff]   ;;  %v1513_v40 = vld [vmem:[#allocation7 + $0x4] ss:$8 sps:$4 sm:$0xff]   ;;  %v1515_v41 = vld [vmem:[#allocation7] ss:$8 sps:$4 sm:$0xff]  }
  0x91   : > { %v1516_v42 = vld [vmem:[#allocation7 + $0x14] ss:$8 sps:$4 sm:$0xff]   ;;  %858 = vmatprep.subr.bf16.mxu1 %v1513_v40  ;;  %v1518_v43 = vld [vmem:[#allocation7 + $0x10] ss:$8 sps:$4 sm:$0xff]   ;;  %v1519_v44 = vld [vmem:[#allocation7 + $0x24] ss:$8 sps:$4 sm:$0xff]  }
  0x92   : > { %859 = vmatpush1.bf16.msra.mxu1 %v1515_v41  ;;  %v1521_v45 = vld [vmem:[#allocation7 + $0x20] ss:$8 sps:$4 sm:$0xff]   ;;  %v1522_v46 = vld [vmem:[#allocation7 + $0x34] ss:$8 sps:$4 sm:$0xff]   ;;  %v1524_v47 = vld [vmem:[#allocation7 + $0x30] ss:$8 sps:$4 sm:$0xff]  }
  0x93   : > { %573 = vmatpush1.bf16.msra.mxu0 %v1474_v7  ;;  %860 = vmatprep.subr.bf16.mxu1 %v1516_v42  ;;  %v1525_v48 = vld [vmem:[#allocation7 + $0x44] ss:$8 sps:$4 sm:$0xff]   ;;  %v1527_v49 = vld [vmem:[#allocation7 + $0x40] ss:$8 sps:$4 sm:$0xff]   ;;  %v1528_v50 = vld [vmem:[#allocation7 + $0x54] ss:$8 sps:$4 sm:$0xff]  }
  0x94   : > { %574 = vmatprep.subr.bf16.mxu0 %v1475_v8  ;;  %v1530_v51 = vld [vmem:[#allocation7 + $0x50] ss:$8 sps:$4 sm:$0xff]   ;;  %v1531_v52 = vld [vmem:[#allocation7 + $0x64] ss:$8 sps:$4 sm:$0xff]   ;;  %v1533_v53 = vld [vmem:[#allocation7 + $0x60] ss:$8 sps:$4 sm:$0xff]  }
  0x95   : > { %v1534_v54 = vld [vmem:[#allocation7 + $0x74] ss:$8 sps:$4 sm:$0xff]   ;;  %v1536_v55 = vld [vmem:[#allocation7 + $0x70] ss:$8 sps:$4 sm:$0xff]   ;;  %v1537_v56 = vld [vmem:[#allocation7 + $0x84] ss:$8 sps:$4 sm:$0xff]  }
  0x96   : > { %861 = vmatpush1.bf16.msra.mxu1 %v1518_v43  ;;  %v1539_v57 = vld [vmem:[#allocation7 + $0x80] ss:$8 sps:$4 sm:$0xff]   ;;  %v1540_v58 = vld [vmem:[#allocation7 + $0x94] ss:$8 sps:$4 sm:$0xff]   ;;  %v1542_v59 = vld [vmem:[#allocation7 + $0x90] ss:$8 sps:$4 sm:$0xff]  }
  0x97   : > { %575 = vmatpush1.bf16.msra.mxu0 %v1477_v9  ;;  %862 = vmatprep.subr.bf16.mxu1 %v1519_v44  ;;  %v1543_v3 = vld [vmem:[#allocation7 + $0xa4] ss:$8 sps:$4 sm:$0xff]   ;;  %v1545_v4 = vld [vmem:[#allocation7 + $0xa0] ss:$8 sps:$4 sm:$0xff]   ;;  %v1546_v5 = vld [vmem:[#allocation7 + $0xb4] ss:$8 sps:$4 sm:$0xff]  }
  0x98   : > { %576 = vmatprep.subr.bf16.mxu0 %v1478_v10  ;;  %v1548_v6 = vld [vmem:[#allocation7 + $0xb0] ss:$8 sps:$4 sm:$0xff]   ;;  %v1549_v7 = vld [vmem:[#allocation7 + $0xc4] ss:$8 sps:$4 sm:$0xff]   ;;  %v1551_v8 = vld [vmem:[#allocation7 + $0xc0] ss:$8 sps:$4 sm:$0xff]  }
  0x99   : > { %v1552_v9 = vld [vmem:[#allocation7 + $0xd4] ss:$8 sps:$4 sm:$0xff]   ;;  %v1554_v10 = vld [vmem:[#allocation7 + $0xd0] ss:$8 sps:$4 sm:$0xff]   ;;  %v1563_v16 = vld [vmem:[#allocation8 + $0x4] ss:$8 sps:$4 sm:$0xff]  }
  0x9a   : > { %863 = vmatpush1.bf16.msra.mxu1 %v1521_v45  ;;  %v1560_v14 = vld [vmem:[#allocation7 + $0xf0] ss:$8 sps:$4 sm:$0xff]   ;;  %v1597_v40 = vld [vmem:[#allocation8 + $0xc0] ss:$8 sps:$4 sm:$0xff]   ;;  %v1602_v41 = vld [vmem:[#allocation8 + $0xd4] ss:$8 sps:$4 sm:$0xff]   ;;  %v626_v45 = vlaneseq }
  0x9b   : > { %577 = vmatpush1.bf16.msra.mxu0 %v1480_v11  ;;  %864 = vmatprep.subr.bf16.mxu1 %v1522_v46  ;;  %v1555_v11 = vld [vmem:[#allocation7 + $0xe4] ss:$8 sps:$4 sm:$0xff]   ;;  %v1600_v42 = vld [vmem:[#allocation8 + $0xd0] ss:$8 sps:$4 sm:$0xff]   ;;  %s1383_s14 = sshll.u32 %s1874_s9, 8  ;;  %s365_s16 = scalar_lea.vmem [#allocation10], %s1278_s19 }
  0x9c   : > { %578 = vmatprep.subr.bf16.mxu0 %v1481_v12  ;;  %v1557_v12 = vld [vmem:[#allocation7 + $0xe0] ss:$8 sps:$4 sm:$0xff]   ;;  %s1165_s12 = sshll.u32 %s365_s16, 4  ;;  %s2098_s11 = scalar_lea.hbm %s2150_s8, %s1383_s14  ;;  %s2100_s12 = int_to_ptr.vmem [resolvable:$true] %s1165_s12 }
  0x9d   : > { %s1151_s9 = scalar_lea.sflag [#allocation4], %s2052_s27  ;;  %s1725_s13 = scalar_lea.vmem %s2100_s12, 256 }
  0x9e   : > { %865 = vmatpush1.bf16.msra.mxu1 %v1524_v47  ;;  %v627_v47 = vshrl.u32 %v626_v45, 7  ;;  %p1726_p10 = scmp.ne.s32.totalorder %s2100_s12, %s1725_s13  ;;  %s1807_s10 = smov [#allocation10]  }
  0x9f   : > { %579 = vmatpush1.bf16.msra.mxu0 %v1483_v13  ;;  %866 = vmatprep.subr.bf16.mxu1 %v1525_v48  ;;  %v1558_v13 = vld [vmem:[#allocation7 + $0xf4] ss:$8 sps:$4 sm:$0xff]   ;;  %s1729_s17 = sshll.u32 %s1807_s10, 4  ;;  %s1730_s17 = int_to_ptr.vmem [resolvable:$false] %s1729_s17 }
  0xa0   : > { %580 = vmatprep.subr.bf16.mxu0 %v1484_v15  ;;  %v1561_v15 = vld [vmem:[#allocation8] ss:$8 sps:$4 sm:$0xff]   ;;  %v628_v48 = vsub.s32 0, %v627_v47  ;;  %p1727_p3 = pnand %p1726_p10, %p2007_p5  ;;  %s1731_s15 = scalar_lea.vmem %s1730_s17, 512 }
  0xa1   : > { %p1732_p12 = scmp.lt.s32.totalorder %s2100_s12, %s1730_s17  ;;  %p1733_p1 = scmp.lt.s32.totalorder %s1731_s15, %s1725_s13 }
  0xa2   : > { %867 = vmatpush1.bf16.msra.mxu1 %v1527_v49  ;;  %v632_v49 = vsub.s32 1, %v627_v47  ;;  %p1728_p7 = pneg %p1727_p3 }
  0xa3   : > { %581 = vmatpush1.bf16.msra.mxu0 %v1486_v17  ;;  %868 = vmatprep.subr.bf16.mxu1 %v1528_v50  ;;  %v1566_v17 = vld [vmem:[#allocation8 + $0x14] ss:$8 sps:$4 sm:$0xff]   ;;  %v624_v50 = vld [vmem:[%s2144_s2] sm:$0x3]  ;;  %p1734_p2 = por %p1733_p1, %p1732_p12 }
  0xa4   : > { %582 = vmatprep.subr.bf16.mxu0 %v1487_v18  ;;  %v1564_v18 = vld [vmem:[#allocation8 + $0x10] ss:$8 sps:$4 sm:$0xff]  }
  0xa5   : > { %p1735_p4 = pnand %p1734_p2, %p1728_p7 }
  0xa6   : > { %869 = vmatpush1.bf16.msra.mxu1 %v1530_v51  ;;  %v638_v51 = vld [vmem:[%s2145_s3] sm:$0x3] }
  0xa7   : > { %583 = vmatpush1.bf16.msra.mxu0 %v1489_v19  ;;  %870 = vmatprep.subr.bf16.mxu1 %v1531_v52  ;;  %v1569_v19 = vld [vmem:[#allocation8 + $0x24] ss:$8 sps:$4 sm:$0xff]   ;;  %v629_v52 = vrot.slane %v624_v50, %v628_v48 }
  0xa8   : > { %584 = vmatprep.subr.bf16.mxu0 %v1490_v20  ;;  %v1567_v20 = vld [vmem:[#allocation8 + $0x20] ss:$8 sps:$4 sm:$0xff]  }
  0xaa   : > { %871 = vmatpush1.bf16.msra.mxu1 %v1533_v53  ;;  %v633_v53 = vrot.slane %v624_v50, %v632_v49 }
  0xab   : > { %585 = vmatpush1.bf16.msra.mxu0 %v1492_v21  ;;  %872 = vmatprep.subr.bf16.mxu1 %v1534_v54  ;;  %v1572_v21 = vld [vmem:[#allocation8 + $0x34] ss:$8 sps:$4 sm:$0xff]  }
  0xac   : > { %586 = vmatprep.subr.bf16.mxu0 %v1493_v22  ;;  %v1570_v22 = vld [vmem:[#allocation8 + $0x30] ss:$8 sps:$4 sm:$0xff]  }
  0xae   : > { %873 = vmatpush1.bf16.msra.mxu1 %v1536_v55 }
  0xaf   : > { %587 = vmatpush1.bf16.msra.mxu0 %v1495_v23  ;;  %874 = vmatprep.subr.bf16.mxu1 %v1537_v56  ;;  %v1575_v23 = vld [vmem:[#allocation8 + $0x44] ss:$8 sps:$4 sm:$0xff]   ;;  %v643_v56 = vrot.slane %v638_v51, %v628_v48 }
  0xb0   : > { %588 = vmatprep.subr.bf16.mxu0 %v1496_v24  ;;  %v1573_v24 = vld [vmem:[#allocation8 + $0x40] ss:$8 sps:$4 sm:$0xff]  }
  0xb2   : > { %875 = vmatpush1.bf16.msra.mxu1 %v1539_v57  ;;  %v647_v57 = vrot.slane %v638_v51, %v632_v49 }
  0xb3   : > { %589 = vmatpush1.bf16.msra.mxu0 %v1498_v25  ;;  %876 = vmatprep.subr.bf16.mxu1 %v1540_v58  ;;  %v1578_v25 = vld [vmem:[#allocation8 + $0x54] ss:$8 sps:$4 sm:$0xff]  }
  0xb4   : > { %590 = vmatprep.subr.bf16.mxu0 %v1499_v26  ;;  %v1576_v26 = vld [vmem:[#allocation8 + $0x50] ss:$8 sps:$4 sm:$0xff]  }
  0xb6   : > { %877 = vmatpush1.bf16.msra.mxu1 %v1542_v59 }
  0xb7   : > { %591 = vmatpush1.bf16.msra.mxu0 %v1501_v27  ;;  %878 = vmatprep.subr.bf16.mxu1 %v1543_v3  ;;  %v1581_v27 = vld [vmem:[#allocation8 + $0x64] ss:$8 sps:$4 sm:$0xff]  }
  0xb8   : > { %592 = vmatprep.subr.bf16.mxu0 %v1502_v28  ;;  %v1579_v28 = vld [vmem:[#allocation8 + $0x60] ss:$8 sps:$4 sm:$0xff]   ;;  %v1605_v3 = vld [vmem:[#allocation8 + $0xe4] ss:$8 sps:$4 sm:$0xff]  }
  0xba   : > { %879 = vmatpush1.bf16.msra.mxu1 %v1545_v4  ;;  %v1603_v4 = vld [vmem:[#allocation8 + $0xe0] ss:$8 sps:$4 sm:$0xff]  }
  0xbb   : > { %593 = vmatpush1.bf16.msra.mxu0 %v1504_v29  ;;  %880 = vmatprep.subr.bf16.mxu1 %v1546_v5  ;;  %v1584_v29 = vld [vmem:[#allocation8 + $0x74] ss:$8 sps:$4 sm:$0xff]  }
  0xbc   : > { %594 = vmatprep.subr.bf16.mxu0 %v1505_v30  ;;  %v1582_v30 = vld [vmem:[#allocation8 + $0x70] ss:$8 sps:$4 sm:$0xff]   ;;  %v1608_v5 = vld [vmem:[#allocation8 + $0xf4] ss:$8 sps:$4 sm:$0xff]  }
  0xbe   : > { %881 = vmatpush1.bf16.msra.mxu1 %v1548_v6  ;;  %v1606_v6 = vld [vmem:[#allocation8 + $0xf0] ss:$8 sps:$4 sm:$0xff]  }
  0xbf   : > { %595 = vmatpush1.bf16.msra.mxu0 %v1507_v31  ;;  %882 = vmatprep.subr.bf16.mxu1 %v1549_v7  ;;  %v1587_v31 = vld [vmem:[#allocation8 + $0x84] ss:$8 sps:$4 sm:$0xff]  }
  0xc0   : > { %596 = vmatprep.subr.bf16.mxu0 %v1508_v32  ;;  %v1585_v32 = vld [vmem:[#allocation8 + $0x80] ss:$8 sps:$4 sm:$0xff]  }
  0xc2   : > { %883 = vmatpush1.bf16.msra.mxu1 %v1551_v8 }
  0xc3   : > { %597 = vmatpush1.bf16.msra.mxu0 %v1510_v33  ;;  %884 = vmatprep.subr.bf16.mxu1 %v1552_v9  ;;  %v1590_v33 = vld [vmem:[#allocation8 + $0x94] ss:$8 sps:$4 sm:$0xff]  }
  0xc4   : > { %1107 = vmatprep.subr.bf16.mxu0 %v1563_v16 }
  0xc6   : > { %599 = vmatmul.mubr.bf16.vlgmr.msra.gmra.mrb[0].mxu0 %v1279_v34  ;;  %885 = vmatpush1.bf16.msra.mxu1 %v1554_v10  ;;  %v1588_v34 = vld [vmem:[#allocation8 + $0x90] ss:$8 sps:$4 sm:$0xff]  }
  0xc7   : > { %886 = vmatprep.subr.bf16.mxu1 %v1555_v11  ;;  %1108 = vmatpush1.bf16.msra.mxu0 %v1561_v15 }
  0xc8   : > { %1109 = vmatprep.subr.bf16.mxu0 %v1566_v17 }
  0xca   : > { %887 = vmatpush1.bf16.msra.mxu1 %v1557_v12 }
  0xcb   : > { %888 = vmatprep.subr.bf16.mxu1 %v1558_v13  ;;  %1110 = vmatpush1.bf16.msra.mxu0 %v1564_v18  ;;  %v935_v18 = vld [vmem:[%s2149_s7] sm:$0x3] }
  0xcc   : > { %1111 = vmatprep.subr.bf16.mxu0 %v1569_v19  ;;  %v940_v19 = vrot.slane %v935_v18, %v628_v48 }
  0xce   : > { %889 = vmatpush1.bf16.msra.mxu1 %v1560_v14 }
  0xcf   : > { %1112 = vmatpush1.bf16.msra.mxu0 %v1567_v20  ;;  %v944_v20 = vrot.slane %v935_v18, %v632_v49 }
  0xd0   : > { %1113 = vmatprep.subr.bf16.mxu0 %v1572_v21 }
  0xd3   : > { %1114 = vmatpush1.bf16.msra.mxu0 %v1570_v22 }
  0xd4   : > { %1115 = vmatprep.subr.bf16.mxu0 %v1575_v23 }
  0xd7   : > { %1116 = vmatpush1.bf16.msra.mxu0 %v1573_v24 }
  0xd8   : > { %1117 = vmatprep.subr.bf16.mxu0 %v1578_v25 }
  0xdb   : > { %1118 = vmatpush1.bf16.msra.mxu0 %v1576_v26 }
  0xdc   : > { %1119 = vmatprep.subr.bf16.mxu0 %v1581_v27 }
  0xdf   : > { %1120 = vmatpush1.bf16.msra.mxu0 %v1579_v28 }
  0xe0   : > { %1121 = vmatprep.subr.bf16.mxu0 %v1584_v29 }
  0xe3   : > { %1122 = vmatpush1.bf16.msra.mxu0 %v1582_v30 }
  0xe4   : > { %1123 = vmatprep.subr.bf16.mxu0 %v1587_v31 }
  0xe7   : > { %1124 = vmatpush1.bf16.msra.mxu0 %v1585_v32 }
  0xe8   : > { %1125 = vmatprep.subr.bf16.mxu0 %v1590_v33 }
  0xeb   : > { %1126 = vmatpush1.bf16.msra.mxu0 %v1588_v34 }
 0x199   : > { %v600_v35 = vpop.f32.mrb[0].mxu0 }
 0x19a   : > { %v602_v36 = vpop.f32.mrb[1].mxu0 }
 0x19b   : > { %v604_v37 = vpop.f32.mrb[2].mxu0  ;;  %v607_v38 = vadd.f32 %v602_v36, %v600_v35 }
 0x19c   : > { %v605_v39 = vpop.f32.mrb[3].mxu0  ;;  %v1596_v37 = vld [vmem:[#allocation8 + $0xb4] ss:$8 sps:$4 sm:$0xff]  }
 0x19d   : > { %608 = vadd.xlane.f32.xlu0 %v607_v38  ;;  %v1594_v38 = vld [vmem:[#allocation8 + $0xb0] ss:$8 sps:$4 sm:$0xff]   ;;  %v1599_v39 = vld [vmem:[#allocation8 + $0xc4] ss:$8 sps:$4 sm:$0xff]  }
 0x22a   : > { %v609_v60 = vpop.xlane.xlu0 %608 }
 0x22b   : > { %v611_v61 = vmul.f32 0.00390625, %v609_v60 }
 0x22d   : > { %v2071_v62 = vsub.f32 %v600_v35, %v611_v61  ;;  %v2073_v63 = vsub.f32 %v602_v36, %v611_v61  ;;  %v1593_v35 = vld [vmem:[#allocation8 + $0xa4] ss:$8 sps:$4 sm:$0xff]   ;;  %v1591_v36 = vld [vmem:[#allocation8 + $0xa0] ss:$8 sps:$4 sm:$0xff]  }
 0x22e   : > { %1127 = vmatprep.subr.bf16.mxu0 %v1593_v35 }
 0x22f   : > { %v614_v0 = vmul.f32 %v2071_v62, %v2071_v62  ;;  %v615_v1 = vmul.f32 %v2073_v63, %v2073_v63  ;;  %1128 = vmatpush1.bf16.msra.mxu0 %v1591_v36 }
 0x230   : > { %1129 = vmatprep.subr.bf16.mxu0 %v1596_v37 }
 0x231   : > { %v616_v2 = vadd.f32 %v615_v1, %v614_v0 }
 0x233   : > { %617 = vadd.xlane.f32.xlu0 %v616_v2  ;;  %1130 = vmatpush1.bf16.msra.mxu0 %v1594_v38 }
 0x234   : > { %1131 = vmatprep.subr.bf16.mxu0 %v1599_v39 }
 0x237   : > { %1132 = vmatpush1.bf16.msra.mxu0 %v1597_v40 }
 0x238   : > { %1133 = vmatprep.subr.bf16.mxu0 %v1602_v41 }
 0x23b   : > { %1134 = vmatpush1.bf16.msra.mxu0 %v1600_v42 }
 0x23c   : > { %1135 = vmatprep.subr.bf16.mxu0 %v1605_v3 }
 0x23f   : > { %1136 = vmatpush1.bf16.msra.mxu0 %v1603_v4 }
 0x240   : > { %1137 = vmatprep.subr.bf16.mxu0 %v1608_v5 }
 0x243   : > { %1138 = vmatpush1.bf16.msra.mxu0 %v1606_v6 }
 0x2c0   : > { %v618_v43 = vpop.xlane.xlu0 %617 }
 0x2c1   : > { %v619_v44 = vmul.f32 0.00390625, %v618_v43 }
 0x2c3   : > { %v620_v46 = vadd.f32 1e-05, %v619_v44 }
 0x2c5   : > { %1609 = vrsqrt.f32 %v620_v46 }
 0x2cf   : > { %v1610_v54 = vpop.eup %1609 }
 0x2d0   : > { %v623_v55 = vmul.f32 %v1610_v54, %v2073_v63  ;;  %v622_v58 = vmul.f32 %v1610_v54, %v2071_v62  ;;  %v686_v62 = vld [vmem:[%s2147_s5] sm:$0x3] }
 0x2d1   : > { %v691_v63 = vrot.slane %v686_v62, %v628_v48  ;;  %v695_v7 = vrot.slane %v686_v62, %v632_v49 }
 0x2d2   : > { %v637_v59 = vmul.f32 %v633_v53, %v623_v55  ;;  %v636_v60 = vmul.f32 %v629_v52, %v622_v58 }
 0x2d4   : > { %v651_v61 = vadd.f32 %v647_v57, %v637_v59  ;;  %v650_v0 = vadd.f32 %v643_v56, %v636_v60 }
 0x2d6   : > { %v653_v1 = vpack.c.bf16 %v651_v61, %v651_v61  ;;  %v652_v2 = vpack.c.bf16 %v650_v0, %v650_v0 }
 0x2d8   : > { %890 = vmatprep.mubr.bf16.mxu1 %v653_v1 }
 0x2d9   : > { %891 = vmatmul.mubr.bf16.vlgmr.msra.gmra.mrb[0].mxu1 %v652_v2 }
 0x3ac   : > { %v892_v8 = vpop.f32.mrb[0].mxu1 }
 0x3ad   : > { %v893_v9 = vadd.f32 %v892_v8, %v691_v63  ;;  %v894_v10 = vpop.f32.mrb[1].mxu1 }
 0x3ae   : > { %v895_v11 = vadd.f32 %v894_v10, %v695_v7  ;;  %v896_v12 = vpop.f32.mrb[2].mxu1 }
 0x3af   : > { %v899_v13 = vmax.f32 %v893_v9, 0.0  ;;  %v897_v14 = vpop.f32.mrb[3].mxu1 }
 0x3b0   : > { %v900_v15 = vmax.f32 %v895_v11, 0.0 }
 0x3b1   : > { %v901_v17 = vpack.c.bf16 %v899_v13, %v899_v13 }
 0x3b2   : > { %v902_v16 = vpack.c.bf16 %v900_v15, %v900_v15 }
 0x3b4   : > { %1139 = vmatprep.mubr.bf16.mxu0 %v902_v16 }
 0x3b5   : > { %1140 = vmatmul.mubr.bf16.vlgmr.msra.gmra.mrb[4].mxu0 %v901_v17 }
 0x488   : > { %v1141_v21 = vpop.f32.mrb[4].mxu0 }
 0x489   : > { %v1142_v22 = vadd.f32 %v1141_v21, %v940_v19  ;;  %v1143_v23 = vpop.f32.mrb[5].mxu0 }
 0x48a   : > { %v1144_v24 = vadd.f32 %v1143_v23, %v944_v20  ;;  %v1145_v25 = vpop.f32.mrb[6].mxu0 }
 0x48b   : > { %1148 = vst [vmem:[%s365_s16] sm:$0xff] %v1142_v22  ;;  %v1146_v26 = vpop.f32.mrb[7].mxu0 }
 0x48c   : > { %1149 = vst [vmem:[%s365_s16 + $0x8] sm:$0xff] %v1144_v24 }
 0x48d   : > { %1738 = shalt.err (!%p1735_p4)
}
 0x48e   : > { %s1739_s27 = scalar_lea.hbm %s2098_s11, 256  ;;  %s1743_s24 = scalar_lea.hbm %s2150_s8, 512 }
 0x48f   : > { %p1740_p0 = scmp.ne.s32.totalorder %s2098_s11, %s1739_s27  ;;  %p1744_p8 = scmp.lt.u32.totalorder %s2098_s11, %s2150_s8 }
 0x490   : > { %p1745_p13 = scmp.lt.u32.totalorder %s1743_s24, %s1739_s27  ;;  %p1747_p10 = scmp.lt.u32.totalorder %s1739_s27, %s2098_s11 }
 0x491   : > { %p1741_p9 = pnand %p1740_p0, %p2007_p5 }
 0x492   : > { %p1746_p6 = por %p1745_p13, %p1744_p8 }
 0x493   : > { %p1742_p11 = pneg %p1741_p9 }
 0x494   : > { %p1748_p3 = por %p1747_p10, %p1746_p6 }
 0x496   : > { %p1749_p7 = pnand %p1748_p3, %p1742_p11 }
 0x498   : > { %1752 = shalt.err (!%p1749_p7)
}
 0x499   : > { %1398 = dma.vmem_to_hbm [thread:$0]  (%p2007_p5), %s2100_s12, 256, %s2098_s11, %s1151_s9  }
 0x49a PF: > { %s2172_s16 = sld [smem:[#allocation15_spill]]  ;;  %s2173_s25 = sld [smem:[#allocation16_spill]] }
 0x49b   : > { %p2175_p1 = scmp.ge.s32.totalorder %s1799_s30, 2 }
 0x4a0   : > { %s1177_s20 = sand.u32 1, %s2172_s16   ;;  %p2174_p12 = scmp.ne.s32.totalorder %s2173_s25, 0 }
 0x4a1   : > { %s1178_s13 = scalar_lea.sflag [#allocation4], %s1177_s20 }
 0x4a2   : > { %p1415_p2 = pnand %p2175_p1, %p2174_p12 }
 0x4a4   : > { %1782 = dma.done.wait (!%p1415_p2), %s1178_s13, 256  }
 0x4a5   : > { %1784 = vsyncadd (!%p1415_p2), %s1178_s13, 4294967040  ;;  %p23_p4 = scmp.ge.s32.totalorder %s1993_s26, 4   ;;  %s2176_s27 = smov %s1791_s28 }
 0x4a6   : > { %s2177_s28 = smov %s1795_s29  ;;  %s2178_s29 = smov %s2003_s22 }
 0x4a7   : > { %s2179_s30 = smov %s1993_s26  ;;  %25 = sbr.rel (!%p23_p4) target bundleno = 7 (0x7), region = 109 }
 0x4ae   :  { %1183 = vsyncpa [#allocation3], 1 }
 0x4af   :  { %1185 = vsyncpa [#allocation3 + $0x1], 1 }
 0x4b0   :  { %1186 = vsyncpa [#allocation6], 1 }
 0x4b1   :  { %1187 = vsyncpa [#allocation9], 1 }
 0x4b2   :  { %1188 = vsyncpa [#allocation4], 1 }
 0x4b3   :  { %1190 = vsyncpa [#allocation4 + $0x1], 1 }

// kernel: _vi_mlp_call.1
= control target key start
LH: loop header
LB: loop body
LE: loop exit
PB: predicated region body
PF: predicated region fallthrough
CT: control target
= control target key end

     0   :  { %13 = vsyncpa [#allocation3], 0  ;;  %s2142_s0 = inlined_call_operand.hbm [shape: bf16[16,256], index: 0, kind: input, shape index: {}]   ;;  %s2143_s1 = inlined_call_operand.hbm [shape: bf16[256,256], index: 1, kind: input, shape index: {}]   ;;  %s2144_s2 = inlined_call_operand.vmem [shape: f32[1,256], index: 2, kind: input, shape index: {}]   ;;  %s2145_s3 = inlined_call_operand.vmem [shape: f32[1,256], index: 3, kind: input, shape index: {}]   ;;  %s2146_s4 = inlined_call_operand.hbm [shape: bf16[256,256], index: 4, kind: input, shape index: {}]   ;;  %s2147_s5 = inlined_call_operand.vmem [shape: f32[1,256], index: 5, kind: input, shape index: {}]   ;;  %s2148_s6 = inlined_call_operand.hbm [shape: bf16[256,256], index: 6, kind: input, shape index: {}]   ;;  %s2149_s7 = inlined_call_operand.vmem [shape: f32[1,256], index: 7, kind: input, shape index: {}]   ;;  %s2150_s8 = inlined_call_operand.hbm [shape: f32[16,256], index: 8, kind: output, shape index: {}]  }
   0x1   :  { %15 = vsyncpa [#allocation3 + $0x1], 0 }
   0x2   :  { %16 = vsyncpa [#allocation6], 0 }
   0x3   :  { %17 = vsyncpa [#allocation9], 0 }
   0x4   :  { %18 = vsyncpa [#allocation4], 0 }
   0x5   :  { %20 = vsyncpa [#allocation4 + $0x1], 0  ;;  %s1853_s27 = smov 0   ;;  %s1855_s28 = smov 0  }
   0x6   :  { %s1857_s29 = smov 0   ;;  %s1859_s30 = smov 0  }
   0x7 LB: > { %2156 = sst [smem:[#allocation15_spill]] %s1787_s27  ;;  %s1874_s9 = sadd.s32 4294967295, %s1799_s30   ;;  %s1799_s30 = sphi %s1859_s30, %s2179_s30   ;;  %s1795_s29 = sphi %s1857_s29, %s2178_s29   ;;  %s1791_s28 = sphi %s1855_s28, %s2177_s28   ;;  %s1787_s27 = sphi %s1853_s27, %s2176_s27  }
   0x8   : > { %s1264_s10 = sadd.s32 4294967294, %s1799_s30   ;;  %p46_p0 = scmp.ne.s32.totalorder %s1791_s28, %s1787_s27 }
   0x9   : > { %p2151_p1 = scmp.eq.s32.totalorder %s1874_s9, 0  ;;  %p223_p3 = scmp.eq.s32.totalorder %s1264_s10, 1 }
   0xa   : > { %p1265_p5 = scmp.ge.s32.totalorder %s1799_s30, 1  ;;  %p230_p7 = scmp.lt.s32.totalorder %s1799_s30, 3 }
   0xb   : > { %p1883_p4 = por %p2151_p1, %p46_p0  ;;  %p1888_p6 = por %p223_p3, %p46_p0 }
   0xc   : > { %p1893_p8 = pnand %p1265_p5, %p230_p7  ;;  %s1801_s14 = smov [#allocation5]  }
   0xd   : > { %s2157_s11 = scalar_select %p1883_p4, 1, 0 }
   0xe   : > { %s2158_s12 = scalar_select %p1888_p6, 1, 0 }
   0xf   : > { %s2160_s13 = scalar_select %p1893_p8, 1, 0 }
  0x10   : > { %2159 = sst [smem:[#allocation16_spill]] %s2158_s12  ;;  %s242_s15 = sshll.u32 %s1801_s14, 4  ;;  %s1897_s15 = int_to_ptr.vmem [resolvable:$true] %s242_s15 }
  0x11   : > { %p1400_p9 = pneg %p1893_p8  ;;  %s1802_s17 = smov [#allocation7]  }
  0x12   : > { %s261_s18 = sshll.u32 %s1802_s17, 4  ;;  %s1803_s19 = smov [#allocation8]   ;;  %s1908_s18 = int_to_ptr.vmem [resolvable:$true] %s261_s18 }
  0x13   : > { %p1904_p11 = pnand %p1400_p9, %p2151_p1  ;;  %s1910_s20 = sshll.u32 %s1803_s19, 4  ;;  %s278_s20 = int_to_ptr.vmem [resolvable:$true] %s1910_s20 }
  0x14   : > { %s1611_s23 = scalar_lea.hbm %s2143_s1, 4096 }
  0x15   : > { %p1612_p12 = scmp.ne.s32.totalorder %s2143_s1, %s1611_s23  ;;  %p1920_p13 = pneg %p1904_p11 }
  0x16   : > { %p1618_p5 = scmp.lt.u32.totalorder %s1611_s23, %s2143_s1 }
  0x17   : > { %p1614_p0 = pnand %p1920_p13, %p1612_p12 }
  0x19   : > { %p1615_p3 = pneg %p1614_p0 }
  0x1b   : > { %p1620_p7 = pnand %p1618_p5, %p1615_p3 }
  0x1d   : > { %1623 = shalt.err (!%p1620_p7)
}
  0x1e   : > { %s1624_s17 = scalar_lea.vmem %s1897_s15, 4096  ;;  %p1632_p2 = scmp.lt.s32.totalorder %s1897_s15, %s1897_s15 }
  0x1f   : > { %p1625_p9 = scmp.ne.s32.totalorder %s1897_s15, %s1624_s17  ;;  %p1633_p6 = scmp.lt.s32.totalorder %s1624_s17, %s1624_s17 }
  0x21   : > { %p1627_p10 = pnand %p1625_p9, %p1920_p13  ;;  %p1634_p12 = por %p1633_p6, %p1632_p2 }
  0x23   : > { %p1628_p1 = pneg %p1627_p10 }
  0x25   : > { %p1635_p0 = pnand %p1634_p12, %p1628_p1 }
  0x27   : > { %1638 = shalt.err (!%p1635_p0)
}
  0x28   : > { %s1804_s19 = smov 128   ;;  %s1805_s21 = smov 8  }
  0x29   : > { %1403 = dma.hbm_to_vmem [thread:$0]  (!%p1904_p11), %s2143_s1, 4096, %s1897_s15, [#allocation6], %s1804_s19, %s1804_s19, %s1805_s21  }
  0x2a   : > { %s1639_s10 = scalar_lea.hbm %s2146_s4, 4096 }
  0x2b   : > { %p1640_p1 = scmp.ne.s32.totalorder %s2146_s4, %s1639_s10  ;;  %p1646_p10 = scmp.lt.u32.totalorder %s1639_s10, %s2146_s4 }
  0x2d   : > { %p1642_p2 = pnand %p1640_p1, %p1920_p13 }
  0x2f   : > { %p1643_p6 = pneg %p1642_p2 }
  0x31   : > { %p1648_p3 = pnand %p1646_p10, %p1643_p6 }
  0x33   : > { %1651 = shalt.err (!%p1648_p3)
}
  0x34   : > { %s1652_s15 = scalar_lea.vmem %s1908_s18, 4096  ;;  %p1660_p12 = scmp.lt.s32.totalorder %s1908_s18, %s1908_s18 }
  0x35   : > { %p1653_p5 = scmp.ne.s32.totalorder %s1908_s18, %s1652_s15  ;;  %p1661_p0 = scmp.lt.s32.totalorder %s1652_s15, %s1652_s15 }
  0x37   : > { %p1655_p7 = pnand %p1653_p5, %p1920_p13  ;;  %p1662_p1 = por %p1661_p0, %p1660_p12 }
  0x39   : > { %p1656_p9 = pneg %p1655_p7 }
  0x3b   : > { %p1663_p2 = pnand %p1662_p1, %p1656_p9 }
  0x3d   : > { %1666 = shalt.err (!%p1663_p2)
}
  0x3e   : > { %1406 = dma.hbm_to_vmem [thread:$0]  (!%p1904_p11), %s2146_s4, 4096, %s1908_s18, [#allocation6], %s1804_s19, %s1804_s19, %s1805_s21  }
  0x3f   : > { %s1667_s24 = scalar_lea.hbm %s2148_s6, 4096 }
  0x40   : > { %p1668_p6 = scmp.ne.s32.totalorder %s2148_s6, %s1667_s24  ;;  %p1674_p5 = scmp.lt.u32.totalorder %s1667_s24, %s2148_s6 }
  0x42   : > { %p1670_p10 = pnand %p1668_p6, %p1920_p13 }
  0x44   : > { %p1671_p3 = pneg %p1670_p10 }
  0x46   : > { %p1676_p7 = pnand %p1674_p5, %p1671_p3 }
  0x48   : > { %1679 = shalt.err (!%p1676_p7)
}
  0x49   : > { %s1680_s15 = scalar_lea.vmem %s278_s20, 4096  ;;  %p1688_p1 = scmp.lt.s32.totalorder %s278_s20, %s278_s20 }
  0x4a   : > { %p1681_p9 = scmp.ne.s32.totalorder %s278_s20, %s1680_s15  ;;  %p1689_p2 = scmp.lt.s32.totalorder %s1680_s15, %s1680_s15 }
  0x4c   : > { %p1683_p12 = pnand %p1681_p9, %p1920_p13  ;;  %p1690_p4 = por %p1689_p2, %p1688_p1 }
  0x4e   : > { %p1684_p0 = pneg %p1683_p12 }
  0x50   : > { %p1691_p8 = pnand %p1690_p4, %p1684_p0 }
  0x52   : > { %1694 = shalt.err (!%p1691_p8)
}
  0x53   : > { %1409 = dma.hbm_to_vmem [thread:$0]  (!%p1904_p11), %s2148_s6, 4096, %s278_s20, [#allocation9], %s1804_s19, %s1804_s19, %s1805_s21  }
  0x54   : > { %s1993_s26 = sadd.s32 1, %s1799_s30   ;;  %s33_s12 = sadd.s32 1, %s1795_s29 }
  0x55   : > { %s30_s16 = ssub.s32 %s1799_s30, %s1993_s26  ;;  %p40_p8 = scmp.ne.s32.totalorder %s1795_s29, %s1791_s28 }
  0x56   : > { %p31_p4 = scmp.eq.s32.totalorder %s30_s16, 0  ;;  %p41_p13 = scmp.eq.s32.totalorder %s1799_s30, 0 }
  0x57   : > { %p1421_p6 = scmp.lt.s32.totalorder %s1799_s30, 2  ;;  %p2163_p3 = scmp.eq.s32.totalorder %s1874_s9, 1 }
  0x58   : > { %s2003_s22 = scalar_select %p31_p4, %s1795_s29, %s33_s12  }
  0x59   : > { %p42_p10 = por %p41_p13, %p40_p8  ;;  %p2007_p5 = por %p2163_p3, %p40_p8 }
  0x5a   : > { %s294_s24 = sand.u32 1, %s1795_s29   ;;  %s1382_s25 = sshll.u32 %s1799_s30, 7 }
  0x5b   : > { %s1270_s20 = sshll.u32 %s294_s24, 3  ;;  %s2016_s10 = scalar_lea.hbm %s2142_s0, %s1382_s25 }
  0x5c   : > { %s298_s14 = scalar_lea.vmem [#allocation2], %s1270_s20  ;;  %p2018_p11 = pnand %p1421_p6, %p42_p10 }
  0x5d   : > { %s306_s17 = sshll.u32 %s298_s14, 4  ;;  %s295_s18 = scalar_lea.sflag [#allocation3], %s294_s24  ;;  %s2022_s17 = int_to_ptr.vmem [resolvable:$true] %s306_s17 }
  0x5e   : > { %s1695_s27 = scalar_lea.hbm %s2016_s10, 128  ;;  %p1697_p9 = pneg %p2018_p11 }
  0x5f   : > { %p1696_p7 = scmp.ne.s32.totalorder %s2016_s10, %s1695_s27  ;;  %s1700_s25 = scalar_lea.hbm %s2142_s0, 256 }
  0x60   : > { %p1701_p1 = scmp.lt.u32.totalorder %s2016_s10, %s2142_s0  ;;  %p1702_p2 = scmp.lt.u32.totalorder %s1700_s25, %s1695_s27 }
  0x61   : > { %p1698_p12 = pnand %p1697_p9, %p1696_p7  ;;  %p1704_p8 = scmp.lt.u32.totalorder %s1695_s27, %s2016_s10 }
  0x62   : > { %p1703_p4 = por %p1702_p2, %p1701_p1 }
  0x63   : > { %p1699_p0 = pneg %p1698_p12 }
  0x64   : > { %p1705_p13 = por %p1704_p8, %p1703_p4 }
  0x66   : > { %p1706_p6 = pnand %p1705_p13, %p1699_p0 }
  0x68   : > { %1709 = shalt.err (!%p1706_p6)
}
  0x69   : > { %s1710_s24 = scalar_lea.vmem %s2022_s17, 128  ;;  %s1806_s21 = smov [#allocation2]  }
  0x6a   : > { %p1711_p10 = scmp.ne.s32.totalorder %s2022_s17, %s1710_s24  ;;  %s1715_s14 = sshll.u32 %s1806_s21, 4  ;;  %s1716_s14 = int_to_ptr.vmem [resolvable:$false] %s1715_s14 }
  0x6b   : > { %s1717_s16 = scalar_lea.vmem %s1716_s14, 256  ;;  %p1718_p12 = scmp.lt.s32.totalorder %s2022_s17, %s1716_s14 }
  0x6c   : > { %p1713_p3 = pnand %p1711_p10, %p1697_p9  ;;  %p1719_p1 = scmp.lt.s32.totalorder %s1717_s16, %s1710_s24 }
  0x6e   : > { %p1714_p7 = pneg %p1713_p3  ;;  %p1720_p2 = por %p1719_p1, %p1718_p12 }
  0x70   : > { %p1721_p4 = pnand %p1720_p2, %p1714_p7 }
  0x72   : > { %1724 = shalt.err (!%p1721_p4)
}
  0x73   : > { %1413 = dma.hbm_to_vmem [thread:$0]  (!%p2018_p11), %s2016_s10, 128, %s2022_s17, %s295_s18  }
  0x74   : > { %p2166_p0 = scmp.ne.s32.totalorder %s2160_s13, 0 }
  0x75   : > { %s2052_s27 = sand.u32 (!%p2166_p0), 1, %s1791_s28   ;;  %p2167_p9 = scmp.ne.s32.totalorder (!%p2166_p0), %s2157_s11, 0 }
  0x76   : > { %315 = sbr.rel (%p2166_p0) target bundleno = 1178 (0x49a), region = 52  ;;  %s1274_s12 = sshll.u32 (!%p2166_p0), %s2052_s27, 3 }
  0x77   : > { %s318_s25 = scalar_lea.sflag (!%p2166_p0), [#allocation3], %s2052_s27  ;;  %s2056_s20 = scalar_lea.vmem (!%p2166_p0), [#allocation2], %s1274_s12 }
  0x7d   : > { %1770 = dma.done.wait (%p2167_p9), %s318_s25, 128  }
  0x7e   : > { %1772 = vsyncadd (%p2167_p9), %s318_s25, 4294967168  ;;  %p2168_p11 = scmp.eq.s32.totalorder %s1874_s9, 0 }
  0x80   : > { %1774 = dma.done.wait (%p2168_p11), [#allocation6], 8192   ;;  %p2169_p8 = pmov %p2168_p11 }
  0x82   : > { %1776 = vsyncadd (%p2169_p8), [#allocation6], 4294959104  ;;  %p2170_p13 = pmov %p2169_p8 }
  0x83   : > { %p2171_p6 = pmov %p2169_p8 }
  0x84   : > { %1778 = dma.done.wait (%p2170_p13), [#allocation9], 4096  }
  0x85   : > { %1780 = vsyncadd (%p2171_p6), [#allocation9], 4294963200  ;;  %v1463_v0 = vld [vmem:[#allocation5 + $0x4] ss:$8 sps:$4 sm:$0xff]   ;;  %v1465_v1 = vld [vmem:[#allocation5] ss:$8 sps:$4 sm:$0xff]  }
  0x86   : > { %566 = vmatprep.subr.bf16.mxu0 %v1463_v0  ;;  %v1466_v2 = vld [vmem:[#allocation5 + $0x14] ss:$8 sps:$4 sm:$0xff]   ;;  %v1468_v3 = vld [vmem:[#allocation5 + $0x10] ss:$8 sps:$4 sm:$0xff]   ;;  %v1469_v4 = vld [vmem:[#allocation5 + $0x24] ss:$8 sps:$4 sm:$0xff]  }
  0x87   : > { %567 = vmatpush1.bf16.msra.mxu0 %v1465_v1  ;;  %v1471_v5 = vld [vmem:[#allocation5 + $0x20] ss:$8 sps:$4 sm:$0xff]   ;;  %v1472_v6 = vld [vmem:[#allocation5 + $0x34] ss:$8 sps:$4 sm:$0xff]   ;;  %v1474_v7 = vld [vmem:[#allocation5 + $0x30] ss:$8 sps:$4 sm:$0xff]  }
  0x88   : > { %568 = vmatprep.subr.bf16.mxu0 %v1466_v2  ;;  %v1475_v8 = vld [vmem:[#allocation5 + $0x44] ss:$8 sps:$4 sm:$0xff]   ;;  %v1477_v9 = vld [vmem:[#allocation5 + $0x40] ss:$8 sps:$4 sm:$0xff]   ;;  %v1478_v10 = vld [vmem:[#allocation5 + $0x54] ss:$8 sps:$4 sm:$0xff]  }
  0x89   : > { %v1480_v11 = vld [vmem:[#allocation5 + $0x50] ss:$8 sps:$4 sm:$0xff]   ;;  %v1481_v12 = vld [vmem:[#allocation5 + $0x64] ss:$8 sps:$4 sm:$0xff]   ;;  %v1483_v13 = vld [vmem:[#allocation5 + $0x60] ss:$8 sps:$4 sm:$0xff]  }
  0x8a   : > { %v366_v14 = vld [vmem:[%s2056_s20] sm:$0xff]  ;;  %v1487_v18 = vld [vmem:[#allocation5 + $0x84] ss:$8 sps:$4 sm:$0xff]   ;;  %v1489_v19 = vld [vmem:[#allocation5 + $0x80] ss:$8 sps:$4 sm:$0xff]   ;;  %s1278_s19 = sshll.u32 %s2052_s27, 4 }
  0x8b   : > { %569 = vmatpush1.bf16.msra.mxu0 %v1468_v3  ;;  %v1484_v15 = vld [vmem:[#allocation5 + $0x74] ss:$8 sps:$4 sm:$0xff]   ;;  %v1280_v16 = vcombine.high %v366_v14, %v366_v14  ;;  %v1486_v17 = vld [vmem:[#allocation5 + $0x70] ss:$8 sps:$4 sm:$0xff]   ;;  %v1493_v22 = vld [vmem:[#allocation5 + $0xa4] ss:$8 sps:$4 sm:$0xff]   ;;  %v1279_v34 = vcombine.low %v366_v14, %v366_v14 }
  0x8c   : > { %570 = vmatprep.subr.bf16.mxu0 %v1469_v4  ;;  %v1490_v20 = vld [vmem:[#allocation5 + $0x94] ss:$8 sps:$4 sm:$0xff]   ;;  %v1492_v21 = vld [vmem:[#allocation5 + $0x90] ss:$8 sps:$4 sm:$0xff]   ;;  %v1495_v23 = vld [vmem:[#allocation5 + $0xa0] ss:$8 sps:$4 sm:$0xff]  }
  0x8d   : > { %598 = vmatprep.mubr.bf16.mxu0 %v1280_v16  ;;  %v1496_v24 = vld [vmem:[#allocation5 + $0xb4] ss:$8 sps:$4 sm:$0xff]   ;;  %v1498_v25 = vld [vmem:[#allocation5 + $0xb0] ss:$8 sps:$4 sm:$0xff]   ;;  %v1499_v26 = vld [vmem:[#allocation5 + $0xc4] ss:$8 sps:$4 sm:$0xff]  }
  0x8e   : > { %v1501_v27 = vld [vmem:[#allocation5 + $0xc0] ss:$8 sps:$4 sm:$0xff]   ;;  %v1502_v28 = vld [vmem:[#allocation5 + $0xd4] ss:$8 sps:$4 sm:$0xff]   ;;  %v1504_v29 = vld [vmem:[#allocation5 + $0xd0] ss:$8 sps:$4 sm:$0xff]  }
  0x8f   : > { %571 = vmatpush1.bf16.msra.mxu0 %v1471_v5  ;;  %v1505_v30 = vld [vmem:[#allocation5 + $0xe4] ss:$8 sps:$4 sm:$0xff]   ;;  %v1507_v31 = vld [vmem:[#allocation5 + $0xe0] ss:$8 sps:$4 sm:$0xff]   ;;  %v1508_v32 = vld [vmem:[#allocation5 + $0xf4] ss:$8 sps:$4 sm:$0xff]  }
  0x90   : > { %572 = vmatprep.subr.bf16.mxu0 %v1472_v6  ;;  %v1510_v33 = vld [vmem:[#allocation5 + $0xf0] ss:$8 sps:$4 sm:$0xff]   ;;  %v1513_v40 = vld [vmem:[#allocation7 + $0x4] ss:$8 sps:$4 sm:$0xff]   ;;  %v1515_v41 = vld [vmem:[#allocation7] ss:$8 sps:$4 sm:$0xff]  }
  0x91   : > { %v1516_v42 = vld [vmem:[#allocation7 + $0x14] ss:$8 sps:$4 sm:$0xff]   ;;  %858 = vmatprep.subr.bf16.mxu1 %v1513_v40  ;;  %v1518_v43 = vld [vmem:[#allocation7 + $0x10] ss:$8 sps:$4 sm:$0xff]   ;;  %v1519_v44 = vld [vmem:[#allocation7 + $0x24] ss:$8 sps:$4 sm:$0xff]  }
  0x92   : > { %859 = vmatpush1.bf16.msra.mxu1 %v1515_v41  ;;  %v1521_v45 = vld [vmem:[#allocation7 + $0x20] ss:$8 sps:$4 sm:$0xff]   ;;  %v1522_v46 = vld [vmem:[#allocation7 + $0x34] ss:$8 sps:$4 sm:$0xff]   ;;  %v1524_v47 = vld [vmem:[#allocation7 + $0x30] ss:$8 sps:$4 sm:$0xff]  }
  0x93   : > { %573 = vmatpush1.bf16.msra.mxu0 %v1474_v7  ;;  %860 = vmatprep.subr.bf16.mxu1 %v1516_v42  ;;  %v1525_v48 = vld [vmem:[#allocation7 + $0x44] ss:$8 sps:$4 sm:$0xff]   ;;  %v1527_v49 = vld [vmem:[#allocation7 + $0x40] ss:$8 sps:$4 sm:$0xff]   ;;  %v1528_v50 = vld [vmem:[#allocation7 + $0x54] ss:$8 sps:$4 sm:$0xff]  }
  0x94   : > { %574 = vmatprep.subr.bf16.mxu0 %v1475_v8  ;;  %v1530_v51 = vld [vmem:[#allocation7 + $0x50] ss:$8 sps:$4 sm:$0xff]   ;;  %v1531_v52 = vld [vmem:[#allocation7 + $0x64] ss:$8 sps:$4 sm:$0xff]   ;;  %v1533_v53 = vld [vmem:[#allocation7 + $0x60] ss:$8 sps:$4 sm:$0xff]  }
  0x95   : > { %v1534_v54 = vld [vmem:[#allocation7 + $0x74] ss:$8 sps:$4 sm:$0xff]   ;;  %v1536_v55 = vld [vmem:[#allocation7 + $0x70] ss:$8 sps:$4 sm:$0xff]   ;;  %v1537_v56 = vld [vmem:[#allocation7 + $0x84] ss:$8 sps:$4 sm:$0xff]  }
  0x96   : > { %861 = vmatpush1.bf16.msra.mxu1 %v1518_v43  ;;  %v1539_v57 = vld [vmem:[#allocation7 + $0x80] ss:$8 sps:$4 sm:$0xff]   ;;  %v1540_v58 = vld [vmem:[#allocation7 + $0x94] ss:$8 sps:$4 sm:$0xff]   ;;  %v1542_v59 = vld [vmem:[#allocation7 + $0x90] ss:$8 sps:$4 sm:$0xff]  }
  0x97   : > { %575 = vmatpush1.bf16.msra.mxu0 %v1477_v9  ;;  %862 = vmatprep.subr.bf16.mxu1 %v1519_v44  ;;  %v1543_v3 = vld [vmem:[#allocation7 + $0xa4] ss:$8 sps:$4 sm:$0xff]   ;;  %v1545_v4 = vld [vmem:[#allocation7 + $0xa0] ss:$8 sps:$4 sm:$0xff]   ;;  %v1546_v5 = vld [vmem:[#allocation7 + $0xb4] ss:$8 sps:$4 sm:$0xff]  }
  0x98   : > { %576 = vmatprep.subr.bf16.mxu0 %v1478_v10  ;;  %v1548_v6 = vld [vmem:[#allocation7 + $0xb0] ss:$8 sps:$4 sm:$0xff]   ;;  %v1549_v7 = vld [vmem:[#allocation7 + $0xc4] ss:$8 sps:$4 sm:$0xff]   ;;  %v1551_v8 = vld [vmem:[#allocation7 + $0xc0] ss:$8 sps:$4 sm:$0xff]  }
  0x99   : > { %v1552_v9 = vld [vmem:[#allocation7 + $0xd4] ss:$8 sps:$4 sm:$0xff]   ;;  %v1554_v10 = vld [vmem:[#allocation7 + $0xd0] ss:$8 sps:$4 sm:$0xff]   ;;  %v1563_v16 = vld [vmem:[#allocation8 + $0x4] ss:$8 sps:$4 sm:$0xff]  }
  0x9a   : > { %863 = vmatpush1.bf16.msra.mxu1 %v1521_v45  ;;  %v1560_v14 = vld [vmem:[#allocation7 + $0xf0] ss:$8 sps:$4 sm:$0xff]   ;;  %v1597_v40 = vld [vmem:[#allocation8 + $0xc0] ss:$8 sps:$4 sm:$0xff]   ;;  %v1602_v41 = vld [vmem:[#allocation8 + $0xd4] ss:$8 sps:$4 sm:$0xff]   ;;  %v626_v45 = vlaneseq }
  0x9b   : > { %577 = vmatpush1.bf16.msra.mxu0 %v1480_v11  ;;  %864 = vmatprep.subr.bf16.mxu1 %v1522_v46  ;;  %v1555_v11 = vld [vmem:[#allocation7 + $0xe4] ss:$8 sps:$4 sm:$0xff]   ;;  %v1600_v42 = vld [vmem:[#allocation8 + $0xd0] ss:$8 sps:$4 sm:$0xff]   ;;  %s1383_s14 = sshll.u32 %s1874_s9, 8  ;;  %s365_s16 = scalar_lea.vmem [#allocation10], %s1278_s19 }
  0x9c   : > { %578 = vmatprep.subr.bf16.mxu0 %v1481_v12  ;;  %v1557_v12 = vld [vmem:[#allocation7 + $0xe0] ss:$8 sps:$4 sm:$0xff]   ;;  %s1165_s12 = sshll.u32 %s365_s16, 4  ;;  %s2098_s11 = scalar_lea.hbm %s2150_s8, %s1383_s14  ;;  %s2100_s12 = int_to_ptr.vmem [resolvable:$true] %s1165_s12 }
  0x9d   : > { %s1151_s9 = scalar_lea.sflag [#allocation4], %s2052_s27  ;;  %s1725_s13 = scalar_lea.vmem %s2100_s12, 256 }
  0x9e   : > { %865 = vmatpush1.bf16.msra.mxu1 %v1524_v47  ;;  %v627_v47 = vshrl.u32 %v626_v45, 7  ;;  %p1726_p10 = scmp.ne.s32.totalorder %s2100_s12, %s1725_s13  ;;  %s1807_s10 = smov [#allocation10]  }
  0x9f   : > { %579 = vmatpush1.bf16.msra.mxu0 %v1483_v13  ;;  %866 = vmatprep.subr.bf16.mxu1 %v1525_v48  ;;  %v1558_v13 = vld [vmem:[#allocation7 + $0xf4] ss:$8 sps:$4 sm:$0xff]   ;;  %s1729_s17 = sshll.u32 %s1807_s10, 4  ;;  %s1730_s17 = int_to_ptr.vmem [resolvable:$false] %s1729_s17 }
  0xa0   : > { %580 = vmatprep.subr.bf16.mxu0 %v1484_v15  ;;  %v1561_v15 = vld [vmem:[#allocation8] ss:$8 sps:$4 sm:$0xff]   ;;  %v628_v48 = vsub.s32 0, %v627_v47  ;;  %p1727_p3 = pnand %p1726_p10, %p2007_p5  ;;  %s1731_s15 = scalar_lea.vmem %s1730_s17, 512 }
  0xa1   : > { %p1732_p12 = scmp.lt.s32.totalorder %s2100_s12, %s1730_s17  ;;  %p1733_p1 = scmp.lt.s32.totalorder %s1731_s15, %s1725_s13 }
  0xa2   : > { %867 = vmatpush1.bf16.msra.mxu1 %v1527_v49  ;;  %v632_v49 = vsub.s32 1, %v627_v47  ;;  %p1728_p7 = pneg %p1727_p3 }
  0xa3   : > { %581 = vmatpush1.bf16.msra.mxu0 %v1486_v17  ;;  %868 = vmatprep.subr.bf16.mxu1 %v1528_v50  ;;  %v1566_v17 = vld [vmem:[#allocation8 + $0x14] ss:$8 sps:$4 sm:$0xff]   ;;  %v624_v50 = vld [vmem:[%s2144_s2] sm:$0x3]  ;;  %p1734_p2 = por %p1733_p1, %p1732_p12 }
  0xa4   : > { %582 = vmatprep.subr.bf16.mxu0 %v1487_v18  ;;  %v1564_v18 = vld [vmem:[#allocation8 + $0x10] ss:$8 sps:$4 sm:$0xff]  }
  0xa5   : > { %p1735_p4 = pnand %p1734_p2, %p1728_p7 }
  0xa6   : > { %869 = vmatpush1.bf16.msra.mxu1 %v1530_v51  ;;  %v638_v51 = vld [vmem:[%s2145_s3] sm:$0x3] }
  0xa7   : > { %583 = vmatpush1.bf16.msra.mxu0 %v1489_v19  ;;  %870 = vmatprep.subr.bf16.mxu1 %v1531_v52  ;;  %v1569_v19 = vld [vmem:[#allocation8 + $0x24] ss:$8 sps:$4 sm:$0xff]   ;;  %v629_v52 = vrot.slane %v624_v50, %v628_v48 }
  0xa8   : > { %584 = vmatprep.subr.bf16.mxu0 %v1490_v20  ;;  %v1567_v20 = vld [vmem:[#allocation8 + $0x20] ss:$8 sps:$4 sm:$0xff]  }
  0xaa   : > { %871 = vmatpush1.bf16.msra.mxu1 %v1533_v53  ;;  %v633_v53 = vrot.slane %v624_v50, %v632_v49 }
  0xab   : > { %585 = vmatpush1.bf16.msra.mxu0 %v1492_v21  ;;  %872 = vmatprep.subr.bf16.mxu1 %v1534_v54  ;;  %v1572_v21 = vld [vmem:[#allocation8 + $0x34] ss:$8 sps:$4 sm:$0xff]  }
  0xac   : > { %586 = vmatprep.subr.bf16.mxu0 %v1493_v22  ;;  %v1570_v22 = vld [vmem:[#allocation8 + $0x30] ss:$8 sps:$4 sm:$0xff]  }
  0xae   : > { %873 = vmatpush1.bf16.msra.mxu1 %v1536_v55 }
  0xaf   : > { %587 = vmatpush1.bf16.msra.mxu0 %v1495_v23  ;;  %874 = vmatprep.subr.bf16.mxu1 %v1537_v56  ;;  %v1575_v23 = vld [vmem:[#allocation8 + $0x44] ss:$8 sps:$4 sm:$0xff]   ;;  %v643_v56 = vrot.slane %v638_v51, %v628_v48 }
  0xb0   : > { %588 = vmatprep.subr.bf16.mxu0 %v1496_v24  ;;  %v1573_v24 = vld [vmem:[#allocation8 + $0x40] ss:$8 sps:$4 sm:$0xff]  }
  0xb2   : > { %875 = vmatpush1.bf16.msra.mxu1 %v1539_v57  ;;  %v647_v57 = vrot.slane %v638_v51, %v632_v49 }
  0xb3   : > { %589 = vmatpush1.bf16.msra.mxu0 %v1498_v25  ;;  %876 = vmatprep.subr.bf16.mxu1 %v1540_v58  ;;  %v1578_v25 = vld [vmem:[#allocation8 + $0x54] ss:$8 sps:$4 sm:$0xff]  }
  0xb4   : > { %590 = vmatprep.subr.bf16.mxu0 %v1499_v26  ;;  %v1576_v26 = vld [vmem:[#allocation8 + $0x50] ss:$8 sps:$4 sm:$0xff]  }
  0xb6   : > { %877 = vmatpush1.bf16.msra.mxu1 %v1542_v59 }
  0xb7   : > { %591 = vmatpush1.bf16.msra.mxu0 %v1501_v27  ;;  %878 = vmatprep.subr.bf16.mxu1 %v1543_v3  ;;  %v1581_v27 = vld [vmem:[#allocation8 + $0x64] ss:$8 sps:$4 sm:$0xff]  }
  0xb8   : > { %592 = vmatprep.subr.bf16.mxu0 %v1502_v28  ;;  %v1579_v28 = vld [vmem:[#allocation8 + $0x60] ss:$8 sps:$4 sm:$0xff]   ;;  %v1605_v3 = vld [vmem:[#allocation8 + $0xe4] ss:$8 sps:$4 sm:$0xff]  }
  0xba   : > { %879 = vmatpush1.bf16.msra.mxu1 %v1545_v4  ;;  %v1603_v4 = vld [vmem:[#allocation8 + $0xe0] ss:$8 sps:$4 sm:$0xff]  }
  0xbb   : > { %593 = vmatpush1.bf16.msra.mxu0 %v1504_v29  ;;  %880 = vmatprep.subr.bf16.mxu1 %v1546_v5  ;;  %v1584_v29 = vld [vmem:[#allocation8 + $0x74] ss:$8 sps:$4 sm:$0xff]  }
  0xbc   : > { %594 = vmatprep.subr.bf16.mxu0 %v1505_v30  ;;  %v1582_v30 = vld [vmem:[#allocation8 + $0x70] ss:$8 sps:$4 sm:$0xff]   ;;  %v1608_v5 = vld [vmem:[#allocation8 + $0xf4] ss:$8 sps:$4 sm:$0xff]  }
  0xbe   : > { %881 = vmatpush1.bf16.msra.mxu1 %v1548_v6  ;;  %v1606_v6 = vld [vmem:[#allocation8 + $0xf0] ss:$8 sps:$4 sm:$0xff]  }
  0xbf   : > { %595 = vmatpush1.bf16.msra.mxu0 %v1507_v31  ;;  %882 = vmatprep.subr.bf16.mxu1 %v1549_v7  ;;  %v1587_v31 = vld [vmem:[#allocation8 + $0x84] ss:$8 sps:$4 sm:$0xff]  }
  0xc0   : > { %596 = vmatprep.subr.bf16.mxu0 %v1508_v32  ;;  %v1585_v32 = vld [vmem:[#allocation8 + $0x80] ss:$8 sps:$4 sm:$0xff]  }
  0xc2   : > { %883 = vmatpush1.bf16.msra.mxu1 %v1551_v8 }
  0xc3   : > { %597 = vmatpush1.bf16.msra.mxu0 %v1510_v33  ;;  %884 = vmatprep.subr.bf16.mxu1 %v1552_v9  ;;  %v1590_v33 = vld [vmem:[#allocation8 + $0x94] ss:$8 sps:$4 sm:$0xff]  }
  0xc4   : > { %1107 = vmatprep.subr.bf16.mxu0 %v1563_v16 }
  0xc6   : > { %599 = vmatmul.mubr.bf16.vlgmr.msra.gmra.mrb[0].mxu0 %v1279_v34  ;;  %885 = vmatpush1.bf16.msra.mxu1 %v1554_v10  ;;  %v1588_v34 = vld [vmem:[#allocation8 + $0x90] ss:$8 sps:$4 sm:$0xff]  }
  0xc7   : > { %886 = vmatprep.subr.bf16.mxu1 %v1555_v11  ;;  %1108 = vmatpush1.bf16.msra.mxu0 %v1561_v15 }
  0xc8   : > { %1109 = vmatprep.subr.bf16.mxu0 %v1566_v17 }
  0xca   : > { %887 = vmatpush1.bf16.msra.mxu1 %v1557_v12 }
  0xcb   : > { %888 = vmatprep.subr.bf16.mxu1 %v1558_v13  ;;  %1110 = vmatpush1.bf16.msra.mxu0 %v1564_v18  ;;  %v935_v18 = vld [vmem:[%s2149_s7] sm:$0x3] }
  0xcc   : > { %1111 = vmatprep.subr.bf16.mxu0 %v1569_v19  ;;  %v940_v19 = vrot.slane %v935_v18, %v628_v48 }
  0xce   : > { %889 = vmatpush1.bf16.msra.mxu1 %v1560_v14 }
  0xcf   : > { %1112 = vmatpush1.bf16.msra.mxu0 %v1567_v20  ;;  %v944_v20 = vrot.slane %v935_v18, %v632_v49 }
  0xd0   : > { %1113 = vmatprep.subr.bf16.mxu0 %v1572_v21 }
  0xd3   : > { %1114 = vmatpush1.bf16.msra.mxu0 %v1570_v22 }
  0xd4   : > { %1115 = vmatprep.subr.bf16.mxu0 %v1575_v23 }
  0xd7   : > { %1116 = vmatpush1.bf16.msra.mxu0 %v1573_v24 }
  0xd8   : > { %1117 = vmatprep.subr.bf16.mxu0 %v1578_v25 }
  0xdb   : > { %1118 = vmatpush1.bf16.msra.mxu0 %v1576_v26 }
  0xdc   : > { %1119 = vmatprep.subr.bf16.mxu0 %v1581_v27 }
  0xdf   : > { %1120 = vmatpush1.bf16.msra.mxu0 %v1579_v28 }
  0xe0   : > { %1121 = vmatprep.subr.bf16.mxu0 %v1584_v29 }
  0xe3   : > { %1122 = vmatpush1.bf16.msra.mxu0 %v1582_v30 }
  0xe4   : > { %1123 = vmatprep.subr.bf16.mxu0 %v1587_v31 }
  0xe7   : > { %1124 = vmatpush1.bf16.msra.mxu0 %v1585_v32 }
  0xe8   : > { %1125 = vmatprep.subr.bf16.mxu0 %v1590_v33 }
  0xeb   : > { %1126 = vmatpush1.bf16.msra.mxu0 %v1588_v34 }
 0x199   : > { %v600_v35 = vpop.f32.mrb[0].mxu0 }
 0x19a   : > { %v602_v36 = vpop.f32.mrb[1].mxu0 }
 0x19b   : > { %v604_v37 = vpop.f32.mrb[2].mxu0  ;;  %v607_v38 = vadd.f32 %v602_v36, %v600_v35 }
 0x19c   : > { %v605_v39 = vpop.f32.mrb[3].mxu0  ;;  %v1596_v37 = vld [vmem:[#allocation8 + $0xb4] ss:$8 sps:$4 sm:$0xff]  }
 0x19d   : > { %608 = vadd.xlane.f32.xlu0 %v607_v38  ;;  %v1594_v38 = vld [vmem:[#allocation8 + $0xb0] ss:$8 sps:$4 sm:$0xff]   ;;  %v1599_v39 = vld [vmem:[#allocation8 + $0xc4] ss:$8 sps:$4 sm:$0xff]  }
 0x22a   : > { %v609_v60 = vpop.xlane.xlu0 %608 }
 0x22b   : > { %v611_v61 = vmul.f32 0.00390625, %v609_v60 }
 0x22d   : > { %v2071_v62 = vsub.f32 %v600_v35, %v611_v61  ;;  %v2073_v63 = vsub.f32 %v602_v36, %v611_v61  ;;  %v1593_v35 = vld [vmem:[#allocation8 + $0xa4] ss:$8 sps:$4 sm:$0xff]   ;;  %v1591_v36 = vld [vmem:[#allocation8 + $0xa0] ss:$8 sps:$4 sm:$0xff]  }
 0x22e   : > { %1127 = vmatprep.subr.bf16.mxu0 %v1593_v35 }
 0x22f   : > { %v614_v0 = vmul.f32 %v2071_v62, %v2071_v62  ;;  %v615_v1 = vmul.f32 %v2073_v63, %v2073_v63  ;;  %1128 = vmatpush1.bf16.msra.mxu0 %v1591_v36 }
 0x230   : > { %1129 = vmatprep.subr.bf16.mxu0 %v1596_v37 }
 0x231   : > { %v616_v2 = vadd.f32 %v615_v1, %v614_v0 }
 0x233   : > { %617 = vadd.xlane.f32.xlu0 %v616_v2  ;;  %1130 = vmatpush1.bf16.msra.mxu0 %v1594_v38 }
 0x234   : > { %1131 = vmatprep.subr.bf16.mxu0 %v1599_v39 }
 0x237   : > { %1132 = vmatpush1.bf16.msra.mxu0 %v1597_v40 }
 0x238   : > { %1133 = vmatprep.subr.bf16.mxu0 %v1602_v41 }
 0x23b   : > { %1134 = vmatpush1.bf16.msra.mxu0 %v1600_v42 }
 0x23c   : > { %1135 = vmatprep.subr.bf16.mxu0 %v1605_v3 }
 0x23f   : > { %1136 = vmatpush1.bf16.msra.mxu0 %v1603_v4 }
 0x240   : > { %1137 = vmatprep.subr.bf16.mxu0 %v1608_v5 }
 0x243   : > { %1138 = vmatpush1.bf16.msra.mxu0 %v1606_v6 }
 0x2c0   : > { %v618_v43 = vpop.xlane.xlu0 %617 }
 0x2c1   : > { %v619_v44 = vmul.f32 0.00390625, %v618_v43 }
 0x2c3   : > { %v620_v46 = vadd.f32 1e-05, %v619_v44 }
 0x2c5   : > { %1609 = vrsqrt.f32 %v620_v46 }
 0x2cf   : > { %v1610_v54 = vpop.eup %1609 }
 0x2d0   : > { %v623_v55 = vmul.f32 %v1610_v54, %v2073_v63  ;;  %v622_v58 = vmul.f32 %v1610_v54, %v2071_v62  ;;  %v686_v62 = vld [vmem:[%s2147_s5] sm:$0x3] }
 0x2d1   : > { %v691_v63 = vrot.slane %v686_v62, %v628_v48  ;;  %v695_v7 = vrot.slane %v686_v62, %v632_v49 }
 0x2d2   : > { %v637_v59 = vmul.f32 %v633_v53, %v623_v55  ;;  %v636_v60 = vmul.f32 %v629_v52, %v622_v58 }
 0x2d4   : > { %v651_v61 = vadd.f32 %v647_v57, %v637_v59  ;;  %v650_v0 = vadd.f32 %v643_v56, %v636_v60 }
 0x2d6   : > { %v653_v1 = vpack.c.bf16 %v651_v61, %v651_v61  ;;  %v652_v2 = vpack.c.bf16 %v650_v0, %v650_v0 }
 0x2d8   : > { %890 = vmatprep.mubr.bf16.mxu1 %v653_v1 }
 0x2d9   : > { %891 = vmatmul.mubr.bf16.vlgmr.msra.gmra.mrb[0].mxu1 %v652_v2 }
 0x3ac   : > { %v892_v8 = vpop.f32.mrb[0].mxu1 }
 0x3ad   : > { %v893_v9 = vadd.f32 %v892_v8, %v691_v63  ;;  %v894_v10 = vpop.f32.mrb[1].mxu1 }
 0x3ae   : > { %v895_v11 = vadd.f32 %v894_v10, %v695_v7  ;;  %v896_v12 = vpop.f32.mrb[2].mxu1 }
 0x3af   : > { %v899_v13 = vmax.f32 %v893_v9, 0.0  ;;  %v897_v14 = vpop.f32.mrb[3].mxu1 }
 0x3b0   : > { %v900_v15 = vmax.f32 %v895_v11, 0.0 }
 0x3b1   : > { %v901_v17 = vpack.c.bf16 %v899_v13, %v899_v13 }
 0x3b2   : > { %v902_v16 = vpack.c.bf16 %v900_v15, %v900_v15 }
 0x3b4   : > { %1139 = vmatprep.mubr.bf16.mxu0 %v902_v16 }
 0x3b5   : > { %1140 = vmatmul.mubr.bf16.vlgmr.msra.gmra.mrb[4].mxu0 %v901_v17 }
 0x488   : > { %v1141_v21 = vpop.f32.mrb[4].mxu0 }
 0x489   : > { %v1142_v22 = vadd.f32 %v1141_v21, %v940_v19  ;;  %v1143_v23 = vpop.f32.mrb[5].mxu0 }
 0x48a   : > { %v1144_v24 = vadd.f32 %v1143_v23, %v944_v20  ;;  %v1145_v25 = vpop.f32.mrb[6].mxu0 }
 0x48b   : > { %1148 = vst [vmem:[%s365_s16] sm:$0xff] %v1142_v22  ;;  %v1146_v26 = vpop.f32.mrb[7].mxu0 }
 0x48c   : > { %1149 = vst [vmem:[%s365_s16 + $0x8] sm:$0xff] %v1144_v24 }
 0x48d   : > { %1738 = shalt.err (!%p1735_p4)
}
 0x48e   : > { %s1739_s27 = scalar_lea.hbm %s2098_s11, 256  ;;  %s1743_s24 = scalar_lea.hbm %s2150_s8, 512 }
 0x48f   : > { %p1740_p0 = scmp.ne.s32.totalorder %s2098_s11, %s1739_s27  ;;  %p1744_p8 = scmp.lt.u32.totalorder %s2098_s11, %s2150_s8 }
 0x490   : > { %p1745_p13 = scmp.lt.u32.totalorder %s1743_s24, %s1739_s27  ;;  %p1747_p10 = scmp.lt.u32.totalorder %s1739_s27, %s2098_s11 }
 0x491   : > { %p1741_p9 = pnand %p1740_p0, %p2007_p5 }
 0x492   : > { %p1746_p6 = por %p1745_p13, %p1744_p8 }
 0x493   : > { %p1742_p11 = pneg %p1741_p9 }
 0x494   : > { %p1748_p3 = por %p1747_p10, %p1746_p6 }
 0x496   : > { %p1749_p7 = pnand %p1748_p3, %p1742_p11 }
 0x498   : > { %1752 = shalt.err (!%p1749_p7)
}
 0x499   : > { %1398 = dma.vmem_to_hbm [thread:$0]  (%p2007_p5), %s2100_s12, 256, %s2098_s11, %s1151_s9  }
 0x49a PF: > { %s2172_s16 = sld [smem:[#allocation15_spill]]  ;;  %s2173_s25 = sld [smem:[#allocation16_spill]] }
 0x49b   : > { %p2175_p1 = scmp.ge.s32.totalorder %s1799_s30, 2 }
 0x4a0   : > { %s1177_s20 = sand.u32 1, %s2172_s16   ;;  %p2174_p12 = scmp.ne.s32.totalorder %s2173_s25, 0 }
 0x4a1   : > { %s1178_s13 = scalar_lea.sflag [#allocation4], %s1177_s20 }
 0x4a2   : > { %p1415_p2 = pnand %p2175_p1, %p2174_p12 }
 0x4a4   : > { %1782 = dma.done.wait (!%p1415_p2), %s1178_s13, 256  }
 0x4a5   : > { %1784 = vsyncadd (!%p1415_p2), %s1178_s13, 4294967040  ;;  %p23_p4 = scmp.ge.s32.totalorder %s1993_s26, 4   ;;  %s2176_s27 = smov %s1791_s28 }
 0x4a6   : > { %s2177_s28 = smov %s1795_s29  ;;  %s2178_s29 = smov %s2003_s22 }
 0x4a7   : > { %s2179_s30 = smov %s1993_s26  ;;  %25 = sbr.rel (!%p23_p4) target bundleno = 7 (0x7), region = 109 }
 0x4ae   :  { %1183 = vsyncpa [#allocation3], 1 }
 0x4af   :  { %1185 = vsyncpa [#allocation3 + $0x1], 1 }
 0x4b0   :  { %1186 = vsyncpa [#allocation6], 1 }
 0x4b1   :  { %1187 = vsyncpa [#allocation9], 1 }
 0x4b2   :  { %1188 = vsyncpa [#allocation4], 1 }
 0x4b3   :  { %1190 = vsyncpa [#allocation4 + $0x1], 1 }

</bundles_post_ra>
